<compile_context>
chip_gen: v5e
topology: v5e:2x2
jax: 0.10.0
libtpu: 0.0.40
codegen_flags: <defaults>
</compile_context>

<pallas_src>
import functools

import jax
import jax.numpy as jnp
from jax import lax
from jax.experimental import pallas as pl
from jax.experimental.pallas import tpu as pltpu

EPS = 1e-5


def residual_unit_kernel(x_ref, w1_ref, b1_ref, g1_ref, be1_ref,
                         w2_ref, b2_ref, g2_ref, be2_ref,
                         o_ref, xpad_ref, *, n_batch, width, dilation, mxu_dtype):
    nl, c = x_ref.shape                    # N*L, C (flat activation slab)
    seq = nl // n_batch
    pad = dilation * (width - 1) // 2
    left = ((pad + 7) // 8) * 8            # sublane-aligned interior offset
    inv_nl = 1.0 / nl

    # One memset keeps the halo zero for both conv stages (the interior is
    # overwritten each stage, the halo never is).
    xpad_ref[...] = jnp.zeros(xpad_ref.shape, xpad_ref.dtype)

    def bn_relu(h, g_ref, be_ref):
        # Train-mode BatchNorm1d (biased batch variance) + ReLU.
        # Single pass: sum and sum-of-squares accumulated together.
        s1 = jnp.sum(h, axis=0, keepdims=True)
        s2 = jnp.sum(h * h, axis=0, keepdims=True)
        m = s1 * inv_nl
        v = s2 * inv_nl - m * m
        scale = g_ref[...] * lax.rsqrt(v + EPS)      # (1, C)
        shift = be_ref[...] - m * scale              # (1, C)
        return jnp.maximum(h * scale + shift, 0.0)

    def dilated_conv(a, w_ref, b_ref):
        # a: (N*L, C) f32 post-BN/ReLU activation.  "Same" dilated conv as
        # `width` MXU matmuls with batch folded into M, f32 accumulation.
        xpad_ref[:, left:left + seq, :] = a.reshape(n_batch, seq, c)

        def tap(k):
            start = left - pad + k * dilation        # static slice offset
            t = xpad_ref[:, start:start + seq, :]
            return t.reshape(nl, c).astype(mxu_dtype)

        # Conv bias folded into the first tap's accumulator (hoisted broadcast).
        acc = jnp.dot(tap(0), w_ref[0],
                      preferred_element_type=jnp.float32) + b_ref[...]
        for k in range(1, width):                    # static, small loop
            acc = acc + jnp.dot(tap(k), w_ref[k],
                                preferred_element_type=jnp.float32)
        return acc

    # --- stage 1: BN1 + ReLU + conv1 ---
    a1 = bn_relu(x_ref[...], g1_ref, be1_ref)
    h1 = dilated_conv(a1, w1_ref, b1_ref)            # conv1 output, f32

    # --- stage 2: BN2 + ReLU + conv2 + residual add ---
    a2 = bn_relu(h1, g2_ref, be2_ref)
    y = dilated_conv(a2, w2_ref, b2_ref) + x_ref[...]
    o_ref[...] = y.astype(o_ref.dtype)


def residual_unit_pallas(x_nlc, w1, b1, g1, be1, w2, b2, g2, be2,
                         *, width, dilation, mxu_dtype=jnp.bfloat16):
    n, l_seq, c = x_nlc.shape
    nl = n * l_seq
    assert l_seq % 8 == 0, "sequence length should be sublane-friendly"
    pad = dilation * (width - 1) // 2
    left = ((pad + 7) // 8) * 8
    lp = left + l_seq + pad                          # padded scratch length

    x_flat = x_nlc.reshape(nl, c)
    w1 = w1.astype(mxu_dtype)                        # MXU dtype (bf16 on v6e/v7x)
    w2 = w2.astype(mxu_dtype)

    kern = functools.partial(residual_unit_kernel, n_batch=n, width=width,
                             dilation=dilation, mxu_dtype=mxu_dtype)
    m2 = lambda i: (0, 0)
    m3 = lambda i: (0, 0, 0)
    vec = pl.BlockSpec((1, c), m2)

    out_flat = pl.pallas_call(
        kern,
        out_shape=jax.ShapeDtypeStruct((nl, c), x_nlc.dtype),
        grid_spec=pltpu.PrefetchScalarGridSpec(
            num_scalar_prefetch=0,
            grid=(1,),
            in_specs=[
                pl.BlockSpec((nl, c), m2),           # x, flat (N*L, C)
                pl.BlockSpec((width, c, c), m3),     # conv1 weight (w, Cin, Cout)
                vec,                                 # conv1 bias
                vec, vec,                            # bn1 gamma, beta
                pl.BlockSpec((width, c, c), m3),     # conv2 weight
                vec,                                 # conv2 bias
                vec, vec,                            # bn2 gamma, beta
            ],
            out_specs=pl.BlockSpec((nl, c), m2),
            scratch_shapes=[pltpu.VMEM((n, lp, c), jnp.float32)],
        ),
        compiler_params=pltpu.CompilerParams(
            dimension_semantics=("arbitrary",)),
    )(x_flat, w1, b1, g1, be1, w2, b2, g2, be2)
    return out_flat.reshape(n, l_seq, c)


def reference_ncl(x, w1_oiw, b1, g1, be1, w2_oiw, b2, g2, be2,
                  *, width, dilation, conv_dtype=jnp.float32):
    """Pure-JAX reference matching torch ResidualUnit.forward (train-mode BN).

    conv_dtype lets the reference mirror the kernel's bf16 MXU operands
    (with f32 accumulation) so the comparison tolerance can stay tight."""
    pad = dilation * (width - 1) // 2

    def bn(h, g, b):                      # h: (N, C, L)
        m = jnp.mean(h, axis=(0, 2), keepdims=True)
        v = jnp.mean((h - m) ** 2, axis=(0, 2), keepdims=True)
        return (h - m) * lax.rsqrt(v + EPS) * g[None, :, None] + b[None, :, None]

    def conv(h, w_oiw, b):
        out = lax.conv_general_dilated(
            h.astype(conv_dtype), w_oiw.astype(conv_dtype),
            window_strides=(1,), padding=[(pad, pad)],
            rhs_dilation=(dilation,), dimension_numbers=("NCH", "OIH", "NCH"),
            preferred_element_type=jnp.float32)
        return out + b[None, :, None]

    a1 = jax.nn.relu(bn(x, g1, be1))
    c1 = conv(a1, w1_oiw, b1)
    a2 = jax.nn.relu(bn(c1, g2, be2))
    c2 = conv(a2, w2_oiw, b2)
    return c2 + x


if __name__ == "__main__":
    # ResidualUnit(l=32, w=5, ar=2) on input (batch=2, channels=32, length=64)
    l, w, ar = 32, 5, 2
    N, L = 2, 64

    key = jax.random.PRNGKey(0)
    ks = jax.random.split(key, 10)
    x_ncl = jax.random.normal(ks[0], (N, l, L), dtype=jnp.float32)

    # deterministic params (torch shapes: conv weight (out, in, w), bias (out,))
    w1_oiw = 0.1 * jax.random.normal(ks[1], (l, l, w), dtype=jnp.float32)
    b1 = 0.1 * jax.random.normal(ks[2], (l,), dtype=jnp.float32)
    w2_oiw = 0.1 * jax.random.normal(ks[3], (l, l, w), dtype=jnp.float32)
    b2 = 0.1 * jax.random.normal(ks[4], (l,), dtype=jnp.float32)
    g1 = 1.0 + 0.1 * jax.random.normal(ks[5], (l,), dtype=jnp.float32)
    be1 = 0.1 * jax.random.normal(ks[6], (l,), dtype=jnp.float32)
    g2 = 1.0 + 0.1 * jax.random.normal(ks[7], (l,), dtype=jnp.float32)
    be2 = 0.1 * jax.random.normal(ks[8], (l,), dtype=jnp.float32)

    # wrapper glue: NCL -> NLC, conv weights -> (w, C_in, C_out), params -> (1, C)
    x_nlc = jnp.transpose(x_ncl, (0, 2, 1))
    w1_k = jnp.transpose(w1_oiw, (2, 1, 0))
    w2_k = jnp.transpose(w2_oiw, (2, 1, 0))
    row = lambda v: v.reshape(1, l)

    out_nlc = residual_unit_pallas(
        x_nlc, w1_k, row(b1), row(g1), row(be1),
        w2_k, row(b2), row(g2), row(be2),
        width=w, dilation=ar)                        # bf16 MXU path (v6e/v7x)
    out_nlc = jax.block_until_ready(out_nlc)
    out_ncl = jnp.transpose(out_nlc, (0, 2, 1))
    assert out_ncl.shape == x_ncl.shape

    # Tight check against a reference whose conv operands use the same bf16
    # rounding (f32 accumulation) -> isolates structural/layout errors.
    ref_bf = reference_ncl(x_ncl, w1_oiw, b1, g1, be1, w2_oiw, b2, g2, be2,
                           width=w, dilation=ar, conv_dtype=jnp.bfloat16)
    err_bf = float(jnp.max(jnp.abs(out_ncl - ref_bf)))
    assert jnp.allclose(out_ncl, ref_bf, atol=5e-3, rtol=5e-3), err_bf

    # Coarse sanity check against the full-f32 reference (bf16 MXU rounding is
    # the only intended difference).
    ref_f32 = reference_ncl(x_ncl, w1_oiw, b1, g1, be1, w2_oiw, b2, g2, be2,
                            width=w, dilation=ar, conv_dtype=jnp.float32)
    err_f32 = float(jnp.max(jnp.abs(out_ncl - ref_f32)))
    assert jnp.allclose(out_ncl, ref_f32, atol=1e-1, rtol=1e-1), err_f32

    print("KERNEL_OK")
</pallas_src>

<mosaic_0001>
module attributes {stable_mosaic.version = 11 : i64} {
  func.func @residual_unit_kernel(%arg0: i32, %arg1: memref<128x32xf32, #tpu.memory_space<vmem>>, %arg2: memref<5x32x32xbf16, #tpu.memory_space<vmem>>, %arg3: memref<1x32xf32, #tpu.memory_space<vmem>>, %arg4: memref<1x32xf32, #tpu.memory_space<vmem>>, %arg5: memref<1x32xf32, #tpu.memory_space<vmem>>, %arg6: memref<5x32x32xbf16, #tpu.memory_space<vmem>>, %arg7: memref<1x32xf32, #tpu.memory_space<vmem>>, %arg8: memref<1x32xf32, #tpu.memory_space<vmem>>, %arg9: memref<1x32xf32, #tpu.memory_space<vmem>>, %arg10: memref<128x32xf32, #tpu.memory_space<vmem>>, %arg11: memref<2x76x32xf32, #tpu.memory_space<vmem>>) attributes {dimension_semantics = [#tpu.dimension_semantics<arbitrary>], iteration_bounds = array<i64: 1>, scalar_prefetch = 0 : i64, scratch_operands = 1 : i64, tpu.core_type = #tpu.core_type<tc>, window_params = [{pipeline_mode = #tpu.pipeline_mode<synchronous>, transform_indices = @transform_0, window_bounds = array<i64: 128, 32>}, {pipeline_mode = #tpu.pipeline_mode<synchronous>, transform_indices = @transform_1, window_bounds = array<i64: 5, 32, 32>}, {pipeline_mode = #tpu.pipeline_mode<synchronous>, transform_indices = @transform_2, window_bounds = array<i64: 1, 32>}, {pipeline_mode = #tpu.pipeline_mode<synchronous>, transform_indices = @transform_3, window_bounds = array<i64: 1, 32>}, {pipeline_mode = #tpu.pipeline_mode<synchronous>, transform_indices = @transform_4, window_bounds = array<i64: 1, 32>}, {pipeline_mode = #tpu.pipeline_mode<synchronous>, transform_indices = @transform_5, window_bounds = array<i64: 5, 32, 32>}, {pipeline_mode = #tpu.pipeline_mode<synchronous>, transform_indices = @transform_6, window_bounds = array<i64: 1, 32>}, {pipeline_mode = #tpu.pipeline_mode<synchronous>, transform_indices = @transform_7, window_bounds = array<i64: 1, 32>}, {pipeline_mode = #tpu.pipeline_mode<synchronous>, transform_indices = @transform_8, window_bounds = array<i64: 1, 32>}, {pipeline_mode = #tpu.pipeline_mode<synchronous>, transform_indices = @transform_9, window_bounds = array<i64: 128, 32>}]} {
    %cst = arith.constant 0.000000e+00 : f32
    %0 = vector.broadcast %cst : f32 to vector<2x76x32xf32>
    %c0 = arith.constant 0 : index
    %c0_0 = arith.constant 0 : index
    %c0_1 = arith.constant 0 : index
    %1 = vector.load %arg11[%c0, %c0_0, %c0_1] : memref<2x76x32xf32, #tpu.memory_space<vmem>>, vector<2x76x32xf32>
    tpu.vector_store %arg11[%c0, %c0_0, %c0_1], %0 {strides = array<i32>} : memref<2x76x32xf32, #tpu.memory_space<vmem>>, vector<2x76x32xf32>,
    %c0_2 = arith.constant 0 : index
    %c0_3 = arith.constant 0 : index
    %2 = vector.load %arg1[%c0_2, %c0_3] : memref<128x32xf32, #tpu.memory_space<vmem>>, vector<128x32xf32>
    %cst_4 = arith.constant dense<0.000000e+00> : vector<32xf32>
    %3 = vector.multi_reduction <add>, %2, %cst_4 [0] : vector<128x32xf32> to vector<32xf32>
    %4 = vector.shape_cast %3 : vector<32xf32> to vector<1x32xf32>
    %5 = arith.mulf %2, %2 : vector<128x32xf32>
    %cst_5 = arith.constant dense<0.000000e+00> : vector<32xf32>
    %6 = vector.multi_reduction <add>, %5, %cst_5 [0] : vector<128x32xf32> to vector<32xf32>
    %7 = vector.shape_cast %6 : vector<32xf32> to vector<1x32xf32>
    %cst_6 = arith.constant 7.812500e-03 : f32
    %8 = vector.broadcast %cst_6 : f32 to vector<1x32xf32>
    %9 = arith.mulf %4, %8 : vector<1x32xf32>
    %cst_7 = arith.constant 7.812500e-03 : f32
    %10 = vector.broadcast %cst_7 : f32 to vector<1x32xf32>
    %11 = arith.mulf %7, %10 : vector<1x32xf32>
    %12 = arith.mulf %9, %9 : vector<1x32xf32>
    %13 = arith.subf %11, %12 : vector<1x32xf32>
    %c0_8 = arith.constant 0 : index
    %c0_9 = arith.constant 0 : index
    %14 = vector.load %arg4[%c0_8, %c0_9] : memref<1x32xf32, #tpu.memory_space<vmem>>, vector<1x32xf32>
    %cst_10 = arith.constant 9.99999974E-6 : f32
    %15 = vector.broadcast %cst_10 : f32 to vector<1x32xf32>
    %16 = arith.addf %13, %15 : vector<1x32xf32>
    %17 = math.rsqrt %16 : vector<1x32xf32>
    %18 = arith.mulf %14, %17 : vector<1x32xf32>
    %c0_11 = arith.constant 0 : index
    %c0_12 = arith.constant 0 : index
    %19 = vector.load %arg5[%c0_11, %c0_12] : memref<1x32xf32, #tpu.memory_space<vmem>>, vector<1x32xf32>
    %20 = arith.mulf %9, %18 : vector<1x32xf32>
    %21 = arith.subf %19, %20 : vector<1x32xf32>
    %22 = vector.broadcast %18 : vector<1x32xf32> to vector<128x32xf32>
    %23 = arith.mulf %2, %22 : vector<128x32xf32>
    %24 = vector.broadcast %21 : vector<1x32xf32> to vector<128x32xf32>
    %25 = arith.addf %23, %24 : vector<128x32xf32>
    %cst_13 = arith.constant 0.000000e+00 : f32
    %26 = vector.broadcast %cst_13 : f32 to vector<128x32xf32>
    %27 = arith.maximumf %25, %26 : vector<128x32xf32>
    %28 = vector.shape_cast %27 : vector<128x32xf32> to vector<2x64x32xf32>
    %c0_14 = arith.constant 0 : index
    %c8 = arith.constant 8 : index
    %c0_15 = arith.constant 0 : index
    %29 = vector.load %arg11[%c0_14, %c8, %c0_15] : memref<2x76x32xf32, #tpu.memory_space<vmem>>, vector<2x64x32xf32>
    tpu.vector_store %arg11[%c0_14, %c8, %c0_15], %28 {strides = array<i32>} : memref<2x76x32xf32, #tpu.memory_space<vmem>>, vector<2x64x32xf32>,
    %c0_16 = arith.constant 0 : index
    %c4 = arith.constant 4 : index
    %c0_17 = arith.constant 0 : index
    %30 = vector.load %arg11[%c0_16, %c4, %c0_17] : memref<2x76x32xf32, #tpu.memory_space<vmem>>, vector<2x64x32xf32>
    %31 = vector.shape_cast %30 : vector<2x64x32xf32> to vector<128x32xf32>
    %32 = arith.truncf %31 : vector<128x32xf32> to vector<128x32xbf16>
    %c0_18 = arith.constant 0 : index
    %c0_19 = arith.constant 0 : index
    %c0_20 = arith.constant 0 : index
    %33 = vector.load %arg2[%c0_18, %c0_19, %c0_20] : memref<5x32x32xbf16, #tpu.memory_space<vmem>>, vector<1x32x32xbf16>
    %34 = vector.shape_cast %33 : vector<1x32x32xbf16> to vector<32x32xbf16>
    %cst_21 = arith.constant dense<0.000000e+00> : vector<128x32xf32>
    %35 = tpu.matmul %32, %34, %cst_21 {dimension_numbers = #tpu.dot_dimension_numbers<[1], [0], [0], [1], [0, 0, 1, 1], [], []>} : vector<128x32xbf16>, vector<32x32xbf16>, vector<128x32xf32> -> vector<128x32xf32>
    %c0_22 = arith.constant 0 : index
    %c0_23 = arith.constant 0 : index
    %36 = vector.load %arg3[%c0_22, %c0_23] : memref<1x32xf32, #tpu.memory_space<vmem>>, vector<1x32xf32>
    %37 = vector.broadcast %36 : vector<1x32xf32> to vector<128x32xf32>
    %38 = arith.addf %35, %37 : vector<128x32xf32>
    %c0_24 = arith.constant 0 : index
    %c6 = arith.constant 6 : index
    %c0_25 = arith.constant 0 : index
    %39 = vector.load %arg11[%c0_24, %c6, %c0_25] : memref<2x76x32xf32, #tpu.memory_space<vmem>>, vector<2x64x32xf32>
    %40 = vector.shape_cast %39 : vector<2x64x32xf32> to vector<128x32xf32>
    %41 = arith.truncf %40 : vector<128x32xf32> to vector<128x32xbf16>
    %c1 = arith.constant 1 : index
    %c0_26 = arith.constant 0 : index
    %c0_27 = arith.constant 0 : index
    %42 = vector.load %arg2[%c1, %c0_26, %c0_27] : memref<5x32x32xbf16, #tpu.memory_space<vmem>>, vector<1x32x32xbf16>
    %43 = vector.shape_cast %42 : vector<1x32x32xbf16> to vector<32x32xbf16>
    %cst_28 = arith.constant dense<0.000000e+00> : vector<128x32xf32>
    %44 = tpu.matmul %41, %43, %cst_28 {dimension_numbers = #tpu.dot_dimension_numbers<[1], [0], [0], [1], [0, 0, 1, 1], [], []>} : vector<128x32xbf16>, vector<32x32xbf16>, vector<128x32xf32> -> vector<128x32xf32>
    %45 = arith.addf %38, %44 : vector<128x32xf32>
    %c0_29 = arith.constant 0 : index
    %c8_30 = arith.constant 8 : index
    %c0_31 = arith.constant 0 : index
    %46 = vector.load %arg11[%c0_29, %c8_30, %c0_31] : memref<2x76x32xf32, #tpu.memory_space<vmem>>, vector<2x64x32xf32>
    %47 = vector.shape_cast %46 : vector<2x64x32xf32> to vector<128x32xf32>
    %48 = arith.truncf %47 : vector<128x32xf32> to vector<128x32xbf16>
    %c2 = arith.constant 2 : index
    %c0_32 = arith.constant 0 : index
    %c0_33 = arith.constant 0 : index
    %49 = vector.load %arg2[%c2, %c0_32, %c0_33] : memref<5x32x32xbf16, #tpu.memory_space<vmem>>, vector<1x32x32xbf16>
    %50 = vector.shape_cast %49 : vector<1x32x32xbf16> to vector<32x32xbf16>
    %cst_34 = arith.constant dense<0.000000e+00> : vector<128x32xf32>
    %51 = tpu.matmul %48, %50, %cst_34 {dimension_numbers = #tpu.dot_dimension_numbers<[1], [0], [0], [1], [0, 0, 1, 1], [], []>} : vector<128x32xbf16>, vector<32x32xbf16>, vector<128x32xf32> -> vector<128x32xf32>
    %52 = arith.addf %45, %51 : vector<128x32xf32>
    %c0_35 = arith.constant 0 : index
    %c10 = arith.constant 10 : index
    %c0_36 = arith.constant 0 : index
    %53 = vector.load %arg11[%c0_35, %c10, %c0_36] : memref<2x76x32xf32, #tpu.memory_space<vmem>>, vector<2x64x32xf32>
    %54 = vector.shape_cast %53 : vector<2x64x32xf32> to vector<128x32xf32>
    %55 = arith.truncf %54 : vector<128x32xf32> to vector<128x32xbf16>
    %c3 = arith.constant 3 : index
    %c0_37 = arith.constant 0 : index
    %c0_38 = arith.constant 0 : index
    %56 = vector.load %arg2[%c3, %c0_37, %c0_38] : memref<5x32x32xbf16, #tpu.memory_space<vmem>>, vector<1x32x32xbf16>
    %57 = vector.shape_cast %56 : vector<1x32x32xbf16> to vector<32x32xbf16>
    %cst_39 = arith.constant dense<0.000000e+00> : vector<128x32xf32>
    %58 = tpu.matmul %55, %57, %cst_39 {dimension_numbers = #tpu.dot_dimension_numbers<[1], [0], [0], [1], [0, 0, 1, 1], [], []>} : vector<128x32xbf16>, vector<32x32xbf16>, vector<128x32xf32> -> vector<128x32xf32>
    %59 = arith.addf %52, %58 : vector<128x32xf32>
    %c0_40 = arith.constant 0 : index
    %c12 = arith.constant 12 : index
    %c0_41 = arith.constant 0 : index
    %60 = vector.load %arg11[%c0_40, %c12, %c0_41] : memref<2x76x32xf32, #tpu.memory_space<vmem>>, vector<2x64x32xf32>
    %61 = vector.shape_cast %60 : vector<2x64x32xf32> to vector<128x32xf32>
    %62 = arith.truncf %61 : vector<128x32xf32> to vector<128x32xbf16>
    %c4_42 = arith.constant 4 : index
    %c0_43 = arith.constant 0 : index
    %c0_44 = arith.constant 0 : index
    %63 = vector.load %arg2[%c4_42, %c0_43, %c0_44] : memref<5x32x32xbf16, #tpu.memory_space<vmem>>, vector<1x32x32xbf16>
    %64 = vector.shape_cast %63 : vector<1x32x32xbf16> to vector<32x32xbf16>
    %cst_45 = arith.constant dense<0.000000e+00> : vector<128x32xf32>
    %65 = tpu.matmul %62, %64, %cst_45 {dimension_numbers = #tpu.dot_dimension_numbers<[1], [0], [0], [1], [0, 0, 1, 1], [], []>} : vector<128x32xbf16>, vector<32x32xbf16>, vector<128x32xf32> -> vector<128x32xf32>
    %66 = arith.addf %59, %65 : vector<128x32xf32>
    %cst_46 = arith.constant dense<0.000000e+00> : vector<32xf32>
    %67 = vector.multi_reduction <add>, %66, %cst_46 [0] : vector<128x32xf32> to vector<32xf32>
    %68 = vector.shape_cast %67 : vector<32xf32> to vector<1x32xf32>
    %69 = arith.mulf %66, %66 : vector<128x32xf32>
    %cst_47 = arith.constant dense<0.000000e+00> : vector<32xf32>
    %70 = vector.multi_reduction <add>, %69, %cst_47 [0] : vector<128x32xf32> to vector<32xf32>
    %71 = vector.shape_cast %70 : vector<32xf32> to vector<1x32xf32>
    %cst_48 = arith.constant 7.812500e-03 : f32
    %72 = vector.broadcast %cst_48 : f32 to vector<1x32xf32>
    %73 = arith.mulf %68, %72 : vector<1x32xf32>
    %cst_49 = arith.constant 7.812500e-03 : f32
    %74 = vector.broadcast %cst_49 : f32 to vector<1x32xf32>
    %75 = arith.mulf %71, %74 : vector<1x32xf32>
    %76 = arith.mulf %73, %73 : vector<1x32xf32>
    %77 = arith.subf %75, %76 : vector<1x32xf32>
    %c0_50 = arith.constant 0 : index
    %c0_51 = arith.constant 0 : index
    %78 = vector.load %arg8[%c0_50, %c0_51] : memref<1x32xf32, #tpu.memory_space<vmem>>, vector<1x32xf32>
    %cst_52 = arith.constant 9.99999974E-6 : f32
    %79 = vector.broadcast %cst_52 : f32 to vector<1x32xf32>
    %80 = arith.addf %77, %79 : vector<1x32xf32>
    %81 = math.rsqrt %80 : vector<1x32xf32>
    %82 = arith.mulf %78, %81 : vector<1x32xf32>
    %c0_53 = arith.constant 0 : index
    %c0_54 = arith.constant 0 : index
    %83 = vector.load %arg9[%c0_53, %c0_54] : memref<1x32xf32, #tpu.memory_space<vmem>>, vector<1x32xf32>
    %84 = arith.mulf %73, %82 : vector<1x32xf32>
    %85 = arith.subf %83, %84 : vector<1x32xf32>
    %86 = vector.broadcast %82 : vector<1x32xf32> to vector<128x32xf32>
    %87 = arith.mulf %66, %86 : vector<128x32xf32>
    %88 = vector.broadcast %85 : vector<1x32xf32> to vector<128x32xf32>
    %89 = arith.addf %87, %88 : vector<128x32xf32>
    %cst_55 = arith.constant 0.000000e+00 : f32
    %90 = vector.broadcast %cst_55 : f32 to vector<128x32xf32>
    %91 = arith.maximumf %89, %90 : vector<128x32xf32>
    %92 = vector.shape_cast %91 : vector<128x32xf32> to vector<2x64x32xf32>
    %c0_56 = arith.constant 0 : index
    %c8_57 = arith.constant 8 : index
    %c0_58 = arith.constant 0 : index
    %93 = vector.load %arg11[%c0_56, %c8_57, %c0_58] : memref<2x76x32xf32, #tpu.memory_space<vmem>>, vector<2x64x32xf32>
    tpu.vector_store %arg11[%c0_56, %c8_57, %c0_58], %92 {strides = array<i32>} : memref<2x76x32xf32, #tpu.memory_space<vmem>>, vector<2x64x32xf32>,
    %c0_59 = arith.constant 0 : index
    %c4_60 = arith.constant 4 : index
    %c0_61 = arith.constant 0 : index
    %94 = vector.load %arg11[%c0_59, %c4_60, %c0_61] : memref<2x76x32xf32, #tpu.memory_space<vmem>>, vector<2x64x32xf32>
    %95 = vector.shape_cast %94 : vector<2x64x32xf32> to vector<128x32xf32>
    %96 = arith.truncf %95 : vector<128x32xf32> to vector<128x32xbf16>
    %c0_62 = arith.constant 0 : index
    %c0_63 = arith.constant 0 : index
    %c0_64 = arith.constant 0 : index
    %97 = vector.load %arg6[%c0_62, %c0_63, %c0_64] : memref<5x32x32xbf16, #tpu.memory_space<vmem>>, vector<1x32x32xbf16>
    %98 = vector.shape_cast %97 : vector<1x32x32xbf16> to vector<32x32xbf16>
    %cst_65 = arith.constant dense<0.000000e+00> : vector<128x32xf32>
    %99 = tpu.matmul %96, %98, %cst_65 {dimension_numbers = #tpu.dot_dimension_numbers<[1], [0], [0], [1], [0, 0, 1, 1], [], []>} : vector<128x32xbf16>, vector<32x32xbf16>, vector<128x32xf32> -> vector<128x32xf32>
    %c0_66 = arith.constant 0 : index
    %c0_67 = arith.constant 0 : index
    %100 = vector.load %arg7[%c0_66, %c0_67] : memref<1x32xf32, #tpu.memory_space<vmem>>, vector<1x32xf32>
    %101 = vector.broadcast %100 : vector<1x32xf32> to vector<128x32xf32>
    %102 = arith.addf %99, %101 : vector<128x32xf32>
    %c0_68 = arith.constant 0 : index
    %c6_69 = arith.constant 6 : index
    %c0_70 = arith.constant 0 : index
    %103 = vector.load %arg11[%c0_68, %c6_69, %c0_70] : memref<2x76x32xf32, #tpu.memory_space<vmem>>, vector<2x64x32xf32>
    %104 = vector.shape_cast %103 : vector<2x64x32xf32> to vector<128x32xf32>
    %105 = arith.truncf %104 : vector<128x32xf32> to vector<128x32xbf16>
    %c1_71 = arith.constant 1 : index
    %c0_72 = arith.constant 0 : index
    %c0_73 = arith.constant 0 : index
    %106 = vector.load %arg6[%c1_71, %c0_72, %c0_73] : memref<5x32x32xbf16, #tpu.memory_space<vmem>>, vector<1x32x32xbf16>
    %107 = vector.shape_cast %106 : vector<1x32x32xbf16> to vector<32x32xbf16>
    %cst_74 = arith.constant dense<0.000000e+00> : vector<128x32xf32>
    %108 = tpu.matmul %105, %107, %cst_74 {dimension_numbers = #tpu.dot_dimension_numbers<[1], [0], [0], [1], [0, 0, 1, 1], [], []>} : vector<128x32xbf16>, vector<32x32xbf16>, vector<128x32xf32> -> vector<128x32xf32>
    %109 = arith.addf %102, %108 : vector<128x32xf32>
    %c0_75 = arith.constant 0 : index
    %c8_76 = arith.constant 8 : index
    %c0_77 = arith.constant 0 : index
    %110 = vector.load %arg11[%c0_75, %c8_76, %c0_77] : memref<2x76x32xf32, #tpu.memory_space<vmem>>, vector<2x64x32xf32>
    %111 = vector.shape_cast %110 : vector<2x64x32xf32> to vector<128x32xf32>
    %112 = arith.truncf %111 : vector<128x32xf32> to vector<128x32xbf16>
    %c2_78 = arith.constant 2 : index
    %c0_79 = arith.constant 0 : index
    %c0_80 = arith.constant 0 : index
    %113 = vector.load %arg6[%c2_78, %c0_79, %c0_80] : memref<5x32x32xbf16, #tpu.memory_space<vmem>>, vector<1x32x32xbf16>
    %114 = vector.shape_cast %113 : vector<1x32x32xbf16> to vector<32x32xbf16>
    %cst_81 = arith.constant dense<0.000000e+00> : vector<128x32xf32>
    %115 = tpu.matmul %112, %114, %cst_81 {dimension_numbers = #tpu.dot_dimension_numbers<[1], [0], [0], [1], [0, 0, 1, 1], [], []>} : vector<128x32xbf16>, vector<32x32xbf16>, vector<128x32xf32> -> vector<128x32xf32>
    %116 = arith.addf %109, %115 : vector<128x32xf32>
    %c0_82 = arith.constant 0 : index
    %c10_83 = arith.constant 10 : index
    %c0_84 = arith.constant 0 : index
    %117 = vector.load %arg11[%c0_82, %c10_83, %c0_84] : memref<2x76x32xf32, #tpu.memory_space<vmem>>, vector<2x64x32xf32>
    %118 = vector.shape_cast %117 : vector<2x64x32xf32> to vector<128x32xf32>
    %119 = arith.truncf %118 : vector<128x32xf32> to vector<128x32xbf16>
    %c3_85 = arith.constant 3 : index
    %c0_86 = arith.constant 0 : index
    %c0_87 = arith.constant 0 : index
    %120 = vector.load %arg6[%c3_85, %c0_86, %c0_87] : memref<5x32x32xbf16, #tpu.memory_space<vmem>>, vector<1x32x32xbf16>
    %121 = vector.shape_cast %120 : vector<1x32x32xbf16> to vector<32x32xbf16>
    %cst_88 = arith.constant dense<0.000000e+00> : vector<128x32xf32>
    %122 = tpu.matmul %119, %121, %cst_88 {dimension_numbers = #tpu.dot_dimension_numbers<[1], [0], [0], [1], [0, 0, 1, 1], [], []>} : vector<128x32xbf16>, vector<32x32xbf16>, vector<128x32xf32> -> vector<128x32xf32>
    %123 = arith.addf %116, %122 : vector<128x32xf32>
    %c0_89 = arith.constant 0 : index
    %c12_90 = arith.constant 12 : index
    %c0_91 = arith.constant 0 : index
    %124 = vector.load %arg11[%c0_89, %c12_90, %c0_91] : memref<2x76x32xf32, #tpu.memory_space<vmem>>, vector<2x64x32xf32>
    %125 = vector.shape_cast %124 : vector<2x64x32xf32> to vector<128x32xf32>
    %126 = arith.truncf %125 : vector<128x32xf32> to vector<128x32xbf16>
    %c4_92 = arith.constant 4 : index
    %c0_93 = arith.constant 0 : index
    %c0_94 = arith.constant 0 : index
    %127 = vector.load %arg6[%c4_92, %c0_93, %c0_94] : memref<5x32x32xbf16, #tpu.memory_space<vmem>>, vector<1x32x32xbf16>
    %128 = vector.shape_cast %127 : vector<1x32x32xbf16> to vector<32x32xbf16>
    %cst_95 = arith.constant dense<0.000000e+00> : vector<128x32xf32>
    %129 = tpu.matmul %126, %128, %cst_95 {dimension_numbers = #tpu.dot_dimension_numbers<[1], [0], [0], [1], [0, 0, 1, 1], [], []>} : vector<128x32xbf16>, vector<32x32xbf16>, vector<128x32xf32> -> vector<128x32xf32>
    %130 = arith.addf %123, %129 : vector<128x32xf32>
    %c0_96 = arith.constant 0 : index
    %c0_97 = arith.constant 0 : index
    %131 = vector.load %arg1[%c0_96, %c0_97] : memref<128x32xf32, #tpu.memory_space<vmem>>, vector<128x32xf32>
    %132 = arith.addf %130, %131 : vector<128x32xf32>
    %c0_98 = arith.constant 0 : index
    %c0_99 = arith.constant 0 : index
    %133 = vector.load %arg10[%c0_98, %c0_99] : memref<128x32xf32, #tpu.memory_space<vmem>>, vector<128x32xf32>
    tpu.vector_store %arg10[%c0_98, %c0_99], %132 {strides = array<i32>} : memref<128x32xf32, #tpu.memory_space<vmem>>, vector<128x32xf32>,
    return
  }
  func.func @transform_0(%arg0: i32) -> (i32, i32) {
    %c0_i32 = arith.constant 0 : i32
    %c0_i32_0 = arith.constant 0 : i32
    %c0_i32_1 = arith.constant 0 : i32
    return %c0_i32, %c0_i32_0 : i32, i32
  }
  func.func @transform_1(%arg0: i32) -> (i32, i32, i32) {
    %c0_i32 = arith.constant 0 : i32
    %c0_i32_0 = arith.constant 0 : i32
    %c0_i32_1 = arith.constant 0 : i32
    %c0_i32_2 = arith.constant 0 : i32
    return %c0_i32, %c0_i32_0, %c0_i32_1 : i32, i32, i32
  }
  func.func @transform_2(%arg0: i32) -> (i32, i32) {
    %c0_i32 = arith.constant 0 : i32
    %c0_i32_0 = arith.constant 0 : i32
    %c0_i32_1 = arith.constant 0 : i32
    return %c0_i32, %c0_i32_0 : i32, i32
  }
  func.func @transform_3(%arg0: i32) -> (i32, i32) {
    %c0_i32 = arith.constant 0 : i32
    %c0_i32_0 = arith.constant 0 : i32
    %c0_i32_1 = arith.constant 0 : i32
    return %c0_i32, %c0_i32_0 : i32, i32
  }
  func.func @transform_4(%arg0: i32) -> (i32, i32) {
    %c0_i32 = arith.constant 0 : i32
    %c0_i32_0 = arith.constant 0 : i32
    %c0_i32_1 = arith.constant 0 : i32
    return %c0_i32, %c0_i32_0 : i32, i32
  }
  func.func @transform_5(%arg0: i32) -> (i32, i32, i32) {
    %c0_i32 = arith.constant 0 : i32
    %c0_i32_0 = arith.constant 0 : i32
    %c0_i32_1 = arith.constant 0 : i32
    %c0_i32_2 = arith.constant 0 : i32
    return %c0_i32, %c0_i32_0, %c0_i32_1 : i32, i32, i32
  }
  func.func @transform_6(%arg0: i32) -> (i32, i32) {
    %c0_i32 = arith.constant 0 : i32
    %c0_i32_0 = arith.constant 0 : i32
    %c0_i32_1 = arith.constant 0 : i32
    return %c0_i32, %c0_i32_0 : i32, i32
  }
  func.func @transform_7(%arg0: i32) -> (i32, i32) {
    %c0_i32 = arith.constant 0 : i32
    %c0_i32_0 = arith.constant 0 : i32
    %c0_i32_1 = arith.constant 0 : i32
    return %c0_i32, %c0_i32_0 : i32, i32
  }
  func.func @transform_8(%arg0: i32) -> (i32, i32) {
    %c0_i32 = arith.constant 0 : i32
    %c0_i32_0 = arith.constant 0 : i32
    %c0_i32_1 = arith.constant 0 : i32
    return %c0_i32, %c0_i32_0 : i32, i32
  }
  func.func @transform_9(%arg0: i32) -> (i32, i32) {
    %c0_i32 = arith.constant 0 : i32
    %c0_i32_0 = arith.constant 0 : i32
    %c0_i32_1 = arith.constant 0 : i32
    return %c0_i32, %c0_i32_0 : i32, i32
  }
}

</mosaic_0001>

<bundles_post_ra>
// kernel: tpu_custom_call.1
= control target key start
LH: loop header
LB: loop body
LE: loop exit
PB: predicated region body
PF: predicated region fallthrough
CT: control target
= control target key end

     0   :  { %14 = vsyncpa [#allocation4], 0  ;;  %s2022_s12 = smov [#allocation3]   ;;  %s3010_s0 = inlined_call_operand.vmem [shape: f32[128,32], index: 0, kind: input, shape index: {}]   ;;  %s3011_s1 = inlined_call_operand.vmem [shape: bf16[5,32,32], index: 1, kind: input, shape index: {}]   ;;  %s3012_s2 = inlined_call_operand.vmem [shape: f32[1,32], index: 2, kind: input, shape index: {}]   ;;  %s3013_s3 = inlined_call_operand.hbm [shape: f32[1,32], index: 3, kind: input, shape index: {}]   ;;  %s3014_s4 = inlined_call_operand.vmem [shape: f32[1,32], index: 4, kind: input, shape index: {}]   ;;  %s3015_s5 = inlined_call_operand.vmem [shape: bf16[5,32,32], index: 5, kind: input, shape index: {}]   ;;  %s3016_s6 = inlined_call_operand.vmem [shape: f32[1,32], index: 6, kind: input, shape index: {}]   ;;  %s3017_s7 = inlined_call_operand.vmem [shape: f32[1,32], index: 7, kind: input, shape index: {}]   ;;  %s3018_s8 = inlined_call_operand.vmem [shape: f32[1,32], index: 8, kind: input, shape index: {}]   ;;  %s3019_s9 = inlined_call_operand.vmem [shape: f32[128,32], index: 9, kind: output, shape index: {}]  }
   0x1   :  { %s26_s11 = sshll.u32 %s3013_s3, 4  ;;  %s28_s13 = sshll.u32 %s2022_s12, 4  ;;  %s27_s11 = int_to_ptr.hbm [resolvable:$true] %s26_s11  ;;  %s29_s13 = int_to_ptr.vmem [resolvable:$true] %s28_s13 }
   0x2   :  { %31 = dma.hbm_to_vmem [thread:$0]  %s27_s11, 16, %s29_s13, [#allocation4]  }
   0x3   :  { %2020 = dma.done.wait [#allocation4], 16  }
   0x4   :  { %2021 = vsyncadd [#allocation4], 4294967280  ;;  %vm47_vm0 = vcmask 261120   ;;  %v2023_v0 = vmov 0.0   ;;  %v1965_v1 = vld [vmem:[%s3011_s1 + $0x8] sm:$0xff]  ;;  %v1967_v2 = vld [vmem:[%s3011_s1 + $0x18] sm:$0xff] }
   0x5   :  { %59 = vst.msk [vmem:[#allocation2 + $0x50] sm:$0xff] %vm47_vm0, %v2023_v0  ;;  %v1964_v3 = vld [vmem:[%s3011_s1] sm:$0xff]  ;;  %v2108_v5 = vld [vmem:[%s3010_s0 + $0x8] sm:$0xff]  ;;  %1984 = vmatpush.bf16.msra.mxu2 %v1965_v1  ;;  %1986 = vmatpush.bf16.msra.mxu3 %v1967_v2  ;;  %v1966_v6 = vld [vmem:[%s3011_s1 + $0x10] sm:$0xff]  ;;  %vm57_vm4 = vcmask 257024  }
   0x6   :  { %60 = vst.msk [vmem:[#allocation2 + $0x58] sm:$0xff] %vm47_vm0, %v2023_v0  ;;  %v2103_v4 = vld [vmem:[%s3010_s0] sm:$0xff]  ;;  %v2118_v7 = vld [vmem:[%s3010_s0 + $0x10] sm:$0xff]  ;;  %v2123_v8 = vld [vmem:[%s3010_s0 + $0x18] sm:$0xff]  ;;  %v86_v10 = vsel %vm47_vm0, %v2108_v5, 0.0  ;;  %339 = vmatpush.bf16.msra.mxu0 %v1965_v1  ;;  %453 = vmatpush.bf16.msra.mxu1 %v1967_v2  ;;  %v123_v21 = vmul.f32 %v2108_v5, %v2108_v5 }
   0x7   :  { %61 = vst.msk [vmem:[#allocation2 + $0x60] sm:$0xff] %vm47_vm0, %v2023_v0  ;;  %v85_v9 = vsel %vm47_vm0, %v2103_v4, 0.0  ;;  %v2134_v11 = vld [vmem:[%s3010_s0 + $0x20] sm:$0xff]  ;;  %v88_v13 = vsel %vm47_vm0, %v2118_v7, 0.0  ;;  %v90_v14 = vsel %vm47_vm0, %v2123_v8, 0.0  ;;  %v2143_v15 = vld [vmem:[%s3010_s0 + $0x28] sm:$0xff]  ;;  %v122_v18 = vmul.f32 %v2103_v4, %v2103_v4 }
   0x8   :  { %48 = vst.msk [vmem:[#allocation2] sm:$0xff] %vm47_vm0, %v2023_v0  ;;  %v87_v12 = vadd.f32 %v86_v10, %v85_v9  ;;  %v92_v17 = vsel %vm47_vm0, %v2134_v11, 0.0  ;;  %v2154_v19 = vld [vmem:[%s3010_s0 + $0x30] sm:$0xff]  ;;  %v124_v22 = vmul.f32 %v2118_v7, %v2118_v7  ;;  %v94_v23 = vsel %vm47_vm0, %v2143_v15, 0.0  ;;  %v2169_v24 = vld [vmem:[%s3010_s0 + $0x38] sm:$0xff]  ;;  %v2184_v29 = vld [vmem:[%s3010_s0 + $0x40] sm:$0xff] }
   0x9   :  { %49 = vst.msk [vmem:[#allocation2 + $0x8] sm:$0xff] %vm47_vm0, %v2023_v0  ;;  %1985 = vmatpush.bf16.msra.mxu2 %v1964_v3  ;;  %1987 = vmatpush.bf16.msra.mxu3 %v1966_v6  ;;  %v125_v26 = vmul.f32 %v2123_v8, %v2123_v8  ;;  %v96_v27 = vsel %vm47_vm0, %v2154_v19, 0.0  ;;  %v126_v28 = vmul.f32 %v2134_v11, %v2134_v11  ;;  %v138_v31 = vsel %vm47_vm0, %v122_v18, 0.0  ;;  %v2198_v36 = vld [vmem:[%s3010_s0 + $0x48] sm:$0xff]  ;;  %v2212_v42 = vld [vmem:[%s3010_s0 + $0x50] sm:$0xff]  ;;  %v2222_v48 = vld [vmem:[%s3010_s0 + $0x58] sm:$0xff] }
   0xa   :  { %50 = vst.msk [vmem:[#allocation2 + $0x10] sm:$0xff] %vm47_vm0, %v2023_v0  ;;  %v89_v16 = vadd.f32 %v88_v13, %v87_v12  ;;  %340 = vmatpush.bf16.msra.mxu0 %v1964_v3  ;;  %454 = vmatpush.bf16.msra.mxu1 %v1966_v6  ;;  %v139_v32 = vsel %vm47_vm0, %v123_v21, 0.0  ;;  %v141_v33 = vsel %vm47_vm0, %v124_v22, 0.0  ;;  %v98_v34 = vsel %vm47_vm0, %v2169_v24, 0.0  ;;  %v2232_v54 = vld [vmem:[%s3010_s0 + $0x60] sm:$0xff]  ;;  %v2242_v60 = vld [vmem:[%s3010_s0 + $0x68] sm:$0xff] }
   0xb   :  { %51 = vst.msk [vmem:[#allocation2 + $0x18] sm:$0xff] %vm47_vm0, %v2023_v0  ;;  %v140_v35 = vadd.f32 %v139_v32, %v138_v31  ;;  %v127_v38 = vmul.f32 %v2143_v15, %v2143_v15  ;;  %v143_v39 = vsel %vm47_vm0, %v125_v26, 0.0  ;;  %v100_v40 = vsel %vm47_vm0, %v2184_v29, 0.0  ;;  %v2252_v3 = vld [vmem:[%s3010_s0 + $0x70] sm:$0xff] }
   0xc   :  { %52 = vst.msk [vmem:[#allocation2 + $0x20] sm:$0xff] %vm47_vm0, %v2023_v0  ;;  %v91_v20 = vadd.f32 %v90_v14, %v89_v16  ;;  %v128_v44 = vmul.f32 %v2154_v19, %v2154_v19  ;;  %v145_v45 = vsel %vm47_vm0, %v126_v28, 0.0  ;;  %v102_v46 = vsel %vm47_vm0, %v2198_v36, 0.0  ;;  %v2262_v14 = vld [vmem:[%s3010_s0 + $0x78] sm:$0xff] }
   0xd   :  { %53 = vst.msk [vmem:[#allocation2 + $0x28] sm:$0xff] %vm47_vm0, %v2023_v0  ;;  %v142_v41 = vadd.f32 %v141_v33, %v140_v35  ;;  %v129_v50 = vmul.f32 %v2169_v24, %v2169_v24  ;;  %v147_v51 = vsel %vm47_vm0, %v127_v38, 0.0  ;;  %v104_v52 = vsel %vm47_vm0, %v2212_v42, 0.0 }
   0xe   :  { %54 = vst.msk [vmem:[#allocation2 + $0x30] sm:$0xff] %vm47_vm0, %v2023_v0  ;;  %v93_v25 = vadd.f32 %v92_v17, %v91_v20  ;;  %v130_v56 = vmul.f32 %v2184_v29, %v2184_v29  ;;  %v149_v57 = vsel %vm47_vm0, %v128_v44, 0.0  ;;  %v106_v58 = vsel %vm47_vm0, %v2222_v48, 0.0 }
   0xf   :  { %55 = vst.msk [vmem:[#allocation2 + $0x38] sm:$0xff] %vm47_vm0, %v2023_v0  ;;  %v144_v47 = vadd.f32 %v143_v39, %v142_v41  ;;  %v131_v62 = vmul.f32 %v2198_v36, %v2198_v36  ;;  %v151_v63 = vsel %vm47_vm0, %v129_v50, 0.0  ;;  %v108_v1 = vsel %vm47_vm0, %v2232_v54, 0.0 }
  0x10   :  { %56 = vst.msk [vmem:[#allocation2 + $0x40] sm:$0xff] %vm47_vm0, %v2023_v0  ;;  %v95_v30 = vadd.f32 %v94_v23, %v93_v25  ;;  %v132_v9 = vmul.f32 %v2212_v42, %v2212_v42  ;;  %v153_v10 = vsel %vm47_vm0, %v130_v56, 0.0  ;;  %v110_v12 = vsel %vm47_vm0, %v2242_v60, 0.0 }
  0x11   :  { %62 = vst.msk [vmem:[#allocation2 + $0x68] sm:$0xff] %vm47_vm0, %v2023_v0  ;;  %v146_v53 = vadd.f32 %v145_v45, %v144_v47  ;;  %v133_v17 = vmul.f32 %v2222_v48, %v2222_v48  ;;  %v155_v18 = vsel %vm47_vm0, %v131_v62, 0.0  ;;  %v112_v20 = vsel %vm47_vm0, %v2252_v3, 0.0 }
  0x12   :  { %63 = vst.msk [vmem:[#allocation2 + $0x70] sm:$0xff] %vm47_vm0, %v2023_v0  ;;  %v97_v37 = vadd.f32 %v96_v27, %v95_v30  ;;  %v134_v23 = vmul.f32 %v2232_v54, %v2232_v54  ;;  %v157_v25 = vsel %vm47_vm0, %v132_v9, 0.0  ;;  %v114_v26 = vsel %vm47_vm0, %v2262_v14, 0.0 }
  0x13   :  { %64 = vst.msk [vmem:[#allocation2 + $0x78] sm:$0xff] %vm47_vm0, %v2023_v0  ;;  %v148_v59 = vadd.f32 %v147_v51, %v146_v53  ;;  %v135_v30 = vmul.f32 %v2242_v60, %v2242_v60  ;;  %v159_v31 = vsel %vm47_vm0, %v133_v17, 0.0  ;;  %v137_v39 = vmul.f32 %v2262_v14, %v2262_v14  ;;  %v1971_v17 = vld [vmem:[%s3011_s1 + $0x38] sm:$0xff] }
  0x14   :  { %65 = vst.msk [vmem:[#allocation2 + $0x80] sm:$0xff] %vm47_vm0, %v2023_v0  ;;  %v99_v43 = vadd.f32 %v98_v34, %v97_v37  ;;  %v136_v34 = vmul.f32 %v2252_v3, %v2252_v3  ;;  %v161_v35 = vsel %vm47_vm0, %v134_v23, 0.0  ;;  %713 = vmatpush.bf16.msrb.mxu3 %v1971_v17 }
  0x15   :  { %66 = vst.msk [vmem:[#allocation2 + $0x88] sm:$0xff] %vm47_vm0, %v2023_v0  ;;  %v150_v2 = vadd.f32 %v149_v57, %v148_v59  ;;  %v167_v47 = vsel %vm47_vm0, %v137_v39, 0.0 }
  0x16   :  { %67 = vst.msk [vmem:[#allocation2 + $0x90] sm:$0xff] %vm47_vm0, %v2023_v0  ;;  %v101_v49 = vadd.f32 %v100_v40, %v99_v43  ;;  %v163_v40 = vsel %vm47_vm0, %v135_v30, 0.0  ;;  %v165_v44 = vsel %vm47_vm0, %v136_v34, 0.0 }
  0x17   :  { %v152_v13 = vadd.f32 %v151_v63, %v150_v2  ;;  %58 = vst.msk [vmem:[#allocation2 + $0x48] sm:$0xf] %vm57_vm4, %v2023_v0 }
  0x18   :  { %v103_v55 = vadd.f32 %v102_v46, %v101_v49  ;;  %68 = vst.msk [vmem:[#allocation2 + $0x98] sm:$0xf] %vm57_vm4, %v2023_v0 }
  0x19   :  { %v154_v21 = vadd.f32 %v153_v10, %v152_v13  ;;  %v1969_v13 = vld [vmem:[%s3011_s1 + $0x28] sm:$0xff] }
  0x1a   :  { %v105_v61 = vadd.f32 %v104_v52, %v103_v55  ;;  %583 = vmatpush.bf16.msrb.mxu2 %v1969_v13 }
  0x1b   :  { %v156_v27 = vadd.f32 %v155_v18, %v154_v21  ;;  %v1973_v18 = vld [vmem:[%s3011_s1 + $0x48] sm:$0xff]  ;;  %v179_v21 = vld [vmem:[#allocation3] sm:$0x1] }
  0x1c   :  { %v107_v6 = vadd.f32 %v106_v58, %v105_v61  ;;  %843 = vmatpush.bf16.msrb.mxu0 %v1973_v18  ;;  %v1968_v18 = vld [vmem:[%s3011_s1 + $0x20] sm:$0xff] }
  0x1d   :  { %v158_v32 = vadd.f32 %v157_v25, %v156_v27 }
  0x1e   :  { %v109_v16 = vadd.f32 %v108_v1, %v107_v6  ;;  %584 = vmatpush.bf16.msrb.mxu2 %v1968_v18 }
  0x1f   :  { %v160_v37 = vadd.f32 %v159_v31, %v158_v32 }
  0x20   :  { %v111_v22 = vadd.f32 %v110_v12, %v109_v16 }
  0x21   :  { %v162_v41 = vadd.f32 %v161_v35, %v160_v37 }
  0x22   :  { %v113_v28 = vadd.f32 %v112_v20, %v111_v22 }
  0x23   :  { %v164_v45 = vadd.f32 %v163_v40, %v162_v41 }
  0x24   :  { %v115_v33 = vadd.f32 %v114_v26, %v113_v28  ;;  %v192_v26 = vld [vmem:[%s3014_s4] sm:$0x1] }
  0x25   :  { %v166_v49 = vadd.f32 %v165_v44, %v164_v45 }
  0x26   :  { %v116_v38 = vrot.slane %v115_v33, 4 }
  0x27   :  { %v168_v51 = vadd.f32 %v167_v47, %v166_v49 }
  0x28   :  { %v117_v43 = vadd.f32 %v116_v38, %v115_v33 }
  0x29   :  { %v169_v53 = vrot.slane %v168_v51, 4 }
  0x2a   :  { %v118_v46 = vrot.slane %v117_v43, 2 }
  0x2b   :  { %v170_v56 = vadd.f32 %v169_v53, %v168_v51 }
  0x2c   :  { %v119_v50 = vadd.f32 %v118_v46, %v117_v43 }
  0x2d   :  { %v171_v57 = vrot.slane %v170_v56, 2 }
  0x2e   :  { %v120_v52 = vrot.slane %v119_v50, 1 }
  0x2f   :  { %v172_v58 = vadd.f32 %v171_v57, %v170_v56 }
  0x30   :  { %v121_v55 = vadd.f32 %v120_v52, %v119_v50 }
  0x31   :  { %v173_v61 = vrot.slane %v172_v58, 1 }
  0x32   :  { %v175_v59 = vmul.f32 0.0078125, %v121_v55 }
  0x33   :  { %v174_v62 = vadd.f32 %v173_v61, %v172_v58 }
  0x34   :  { %v177_v63 = vmul.f32 %v175_v59, %v175_v59 }
  0x35   :  { %v176_v1 = vmul.f32 0.0078125, %v174_v62 }
  0x37   :  { %v178_v2 = vsub.f32 %v176_v1, %v177_v63 }
  0x39   :  { %v180_v6 = vadd.f32 1e-05, %v178_v2 }
  0x3b   :  { %1992 = vrsqrt.f32 %v180_v6  ;;  %vm187_vm1 = vweird.f32 %v180_v6 }
  0x41   :  { %v1993_v9 = vpop.eup %1992 }
  0x42   :  { %v182_v10 = vmul.f32 %v1993_v9, %v180_v6  ;;  %vm188_vm2 = vweird.f32 %v1993_v9 }
  0x43   :  { %vm189_vm3 = vmor %vm187_vm1, %vm188_vm2 }
  0x44   :  { %v183_v12 = vmul.f32 %v1993_v9, %v182_v10 }
  0x46   :  { %v184_v16 = vmul.f32 0.5, %v183_v12 }
  0x48   :  { %v185_v20 = vsub.f32 1.5, %v184_v16 }
  0x4a   :  { %v186_v22 = vmul.f32 %v1993_v9, %v185_v20 }
  0x4c   :  { %v190_v23 = vsel %vm189_vm3, %v1993_v9, %v186_v22  ;;  %v1970_v22 = vld [vmem:[%s3011_s1 + $0x30] sm:$0xff] }
  0x4d   :  { %v191_v25 = vmul.f32 %v190_v23, %v179_v21  ;;  %714 = vmatpush.bf16.msrb.mxu3 %v1970_v22 }
  0x4f   :  { %v193_v27 = vmul.f32 %v191_v25, %v175_v59  ;;  %v2297_v28 = vperm.slane %v191_v25, 0  ;;  %v1972_v25 = vld [vmem:[%s3011_s1 + $0x40] sm:$0xff] }
  0x50   :  { %844 = vmatpush.bf16.msrb.mxu0 %v1972_v25 }
  0x51   :  { %v194_v30 = vsub.f32 %v192_v26, %v193_v27  ;;  %v206_v31 = vmul.f32 %v2297_v28, %v2184_v29  ;;  %v207_v32 = vmul.f32 %v2297_v28, %v2198_v36  ;;  %v198_v33 = vmul.f32 %v2297_v28, %v2103_v4 }
  0x52   :  { %v199_v34 = vmul.f32 %v2297_v28, %v2108_v5  ;;  %v208_v35 = vmul.f32 %v2297_v28, %v2212_v42  ;;  %v209_v37 = vmul.f32 %v2297_v28, %v2222_v48  ;;  %v200_v29 = vmul.f32 %v2297_v28, %v2118_v7 }
  0x53   :  { %v2311_v38 = vperm.slane %v194_v30, 0  ;;  %v201_v36 = vmul.f32 %v2297_v28, %v2123_v8  ;;  %v210_v4 = vmul.f32 %v2297_v28, %v2232_v54  ;;  %v211_v7 = vmul.f32 %v2297_v28, %v2242_v60 }
  0x54   :  { %v202_v50 = vmul.f32 %v2297_v28, %v2134_v11  ;;  %v203_v51 = vmul.f32 %v2297_v28, %v2143_v15  ;;  %v212_v20 = vmul.f32 %v2297_v28, %v2252_v3  ;;  %v213_v21 = vmul.f32 %v2297_v28, %v2262_v14 }
  0x55   :  { %v225_v39 = vadd.f32 %v2311_v38, %v206_v31  ;;  %v226_v5 = vadd.f32 %v2311_v38, %v207_v32  ;;  %v217_v42 = vadd.f32 %v2311_v38, %v198_v33  ;;  %v218_v40 = vadd.f32 %v2311_v38, %v199_v34 }
  0x56   :  { %v227_v48 = vadd.f32 %v2311_v38, %v208_v35  ;;  %v228_v41 = vadd.f32 %v2311_v38, %v209_v37  ;;  %v219_v54 = vadd.f32 %v2311_v38, %v200_v29  ;;  %v220_v46 = vadd.f32 %v2311_v38, %v201_v36 }
  0x57   :  { %v241_v43 = vmax.f32 %v225_v39, 0.0  ;;  %v242_v8 = vmax.f32 %v226_v5, 0.0  ;;  %v233_v44 = vmax.f32 %v217_v42, 0.0  ;;  %v234_v45 = vmax.f32 %v218_v40, 0.0 }
  0x58   :  { %v243_v47 = vmax.f32 %v227_v48, 0.0  ;;  %v229_v49 = vadd.f32 %v2311_v38, %v210_v4  ;;  %v244_v60 = vmax.f32 %v228_v41, 0.0  ;;  %v230_v52 = vadd.f32 %v2311_v38, %v211_v7 }
  0x59   :  { %257 = vst.msk [vmem:[#allocation2 + $0x58] sm:$0xff] %vm47_vm0, %v241_v43  ;;  %v235_v53 = vmax.f32 %v219_v54, 0.0  ;;  %v221_v55 = vadd.f32 %v2311_v38, %v202_v50  ;;  %v236_v56 = vmax.f32 %v220_v46, 0.0  ;;  %v222_v57 = vadd.f32 %v2311_v38, %v203_v51 }
  0x5a   :  { %258 = vst.msk [vmem:[#allocation2 + $0x60] sm:$0xff] %vm47_vm0, %v242_v8  ;;  %v245_v11 = vmax.f32 %v229_v49, 0.0  ;;  %v246_v15 = vmax.f32 %v230_v52, 0.0  ;;  %v231_v23 = vadd.f32 %v2311_v38, %v212_v20  ;;  %v232_v3 = vadd.f32 %v2311_v38, %v213_v21 }
  0x5b   :  { %249 = vst.msk [vmem:[#allocation2 + $0x8] sm:$0xff] %vm47_vm0, %v233_v44  ;;  %v237_v58 = vmax.f32 %v221_v55, 0.0  ;;  %v238_v62 = vmax.f32 %v222_v57, 0.0  ;;  %v204_v14 = vmul.f32 %v2297_v28, %v2154_v19  ;;  %v205_v26 = vmul.f32 %v2297_v28, %v2169_v24 }
  0x5c   :  { %250 = vst.msk [vmem:[#allocation2 + $0x10] sm:$0xff] %vm47_vm0, %v234_v45  ;;  %v247_v27 = vmax.f32 %v231_v23, 0.0  ;;  %v248_v30 = vmax.f32 %v232_v3, 0.0 }
  0x5d   :  { %259 = vst.msk [vmem:[#allocation2 + $0x68] sm:$0xff] %vm47_vm0, %v243_v47  ;;  %v223_v31 = vadd.f32 %v2311_v38, %v204_v14  ;;  %v224_v32 = vadd.f32 %v2311_v38, %v205_v26 }
  0x5e   :  { %260 = vst.msk [vmem:[#allocation2 + $0x70] sm:$0xff] %vm47_vm0, %v244_v60 }
  0x5f   :  { %251 = vst.msk [vmem:[#allocation2 + $0x18] sm:$0xff] %vm47_vm0, %v235_v53  ;;  %v239_v33 = vmax.f32 %v223_v31, 0.0  ;;  %v240_v34 = vmax.f32 %v224_v32, 0.0 }
  0x60   :  { %v273_v59 = vld [vmem:[#allocation2 + $0x54] sm:$0xff]  ;;  %252 = vst.msk [vmem:[#allocation2 + $0x20] sm:$0xff] %vm47_vm0, %v236_v56 }
  0x61   :  { %v390_v61 = vld [vmem:[#allocation2 + $0x56] sm:$0xff]  ;;  %v391_v1 = vld [vmem:[#allocation2 + $0x5e] sm:$0xff]  ;;  %261 = vst.msk [vmem:[#allocation2 + $0x78] sm:$0xff] %vm47_vm0, %v245_v11 }
  0x62   :  { %v2345_v63 = vld [vmem:[#allocation2 + $0x5c] sm:$0xff]  ;;  %v402_v6 = vpack.c.bf16 %v391_v1, %v390_v61  ;;  %v265_v9 = vld [vmem:[#allocation2 + $0x4] sm:$0xff]  ;;  %262 = vst.msk [vmem:[#allocation2 + $0x80] sm:$0xff] %vm47_vm0, %v246_v15 }
  0x63   :  { %v285_v2 = vpack.c.bf16 %v2345_v63, %v273_v59  ;;  %v382_v10 = vld [vmem:[#allocation2 + $0x6] sm:$0xff]  ;;  %v383_v13 = vld [vmem:[#allocation2 + $0xe] sm:$0xff]  ;;  %253 = vst.msk [vmem:[#allocation2 + $0x28] sm:$0xff] %vm47_vm0, %v237_v58 }
  0x64   :  { %v2350_v12 = vld [vmem:[#allocation2 + $0xc] sm:$0xff]  ;;  %1804 = vmatmul.msk.bf16.vlgmr.msra.gmra.mxu3 %vm47_vm0, %v402_v6  ;;  %v398_v17 = vpack.c.bf16 %v383_v13, %v382_v10  ;;  %254 = vst.msk [vmem:[#allocation2 + $0x30] sm:$0xff] %vm47_vm0, %v238_v62  ;;  %v2382_v35 = vld [vmem:[#allocation2 + $0x64] sm:$0xff] }
  0x65   :  { %1784 = vmatmul.msk.bf16.vlgmr.msra.gmra.mxu2 %vm47_vm0, %v285_v2  ;;  %v281_v16 = vpack.c.bf16 %v2350_v12, %v265_v9  ;;  %263 = vst.msk [vmem:[#allocation2 + $0x88] sm:$0xff] %vm47_vm0, %v247_v27  ;;  %v2384_v19 = vld [vmem:[#allocation2 + $0x6c] sm:$0xff] }
  0x66   :  { %1800 = vmatmul.msk.bf16.vlgmr.msra.gmra.mxu1 %vm47_vm0, %v398_v17  ;;  %264 = vst.msk [vmem:[#allocation2 + $0x90] sm:$0xff] %vm47_vm0, %v248_v30  ;;  %v392_v37 = vld [vmem:[#allocation2 + $0x66] sm:$0xff]  ;;  %v393_v24 = vld [vmem:[#allocation2 + $0x6e] sm:$0xff]  ;;  %v384_v38 = vld [vmem:[#allocation2 + $0x16] sm:$0xff]  ;;  %v286_v4 = vpack.c.bf16 %v2384_v19, %v2382_v35 }
  0x67   :  { %1780 = vmatmul.msk.bf16.vlgmr.msra.gmra.mxu0 %vm47_vm0, %v281_v16  ;;  %255 = vst.msk [vmem:[#allocation2 + $0x38] sm:$0xff] %vm47_vm0, %v239_v33  ;;  %v267_v28 = vld [vmem:[#allocation2 + $0x14] sm:$0xff]  ;;  %v2388_v29 = vld [vmem:[#allocation2 + $0x1c] sm:$0xff]  ;;  %v403_v39 = vpack.c.bf16 %v393_v24, %v392_v37  ;;  %v512_v61 = vld [vmem:[#allocation2 + $0x8] sm:$0xff] }
  0x68   :  { %256 = vst.msk [vmem:[#allocation2 + $0x40] sm:$0xff] %vm47_vm0, %v240_v34  ;;  %v385_v36 = vld [vmem:[#allocation2 + $0x1e] sm:$0xff]  ;;  %v282_v5 = vpack.c.bf16 %v2388_v29, %v267_v28  ;;  %v2397_v40 = vld [vmem:[#allocation2 + $0x74] sm:$0xff]  ;;  %v642_v1 = vld [vmem:[#allocation2 + $0xa] sm:$0xff]  ;;  %v788_v10 = vpack.c.bf16 %v267_v28, %v2350_v12 }
  0x69   :  { %v399_v42 = vpack.c.bf16 %v385_v36, %v384_v38  ;;  %v2399_v48 = vld [vmem:[#allocation2 + $0x7c] sm:$0xff]  ;;  %v513_v62 = vld [vmem:[#allocation2 + $0x10] sm:$0xff] }
  0x6a   :  { %v394_v41 = vld [vmem:[#allocation2 + $0x76] sm:$0xff]  ;;  %v395_v7 = vld [vmem:[#allocation2 + $0x7e] sm:$0xff]  ;;  %v386_v44 = vld [vmem:[#allocation2 + $0x26] sm:$0xff]  ;;  %v287_v45 = vpack.c.bf16 %v2399_v48, %v2397_v40  ;;  %v528_v6 = vpack.c.bf16 %v513_v62, %v512_v61 }
  0x6b   :  { %v269_v43 = vld [vmem:[#allocation2 + $0x24] sm:$0xff]  ;;  %v270_v8 = vld [vmem:[#allocation2 + $0x2c] sm:$0xff]  ;;  %v404_v46 = vpack.c.bf16 %v395_v7, %v394_v41  ;;  %v514_v13 = vld [vmem:[#allocation2 + $0x18] sm:$0xff] }
  0x6c   :  { %v387_v54 = vld [vmem:[#allocation2 + $0x2e] sm:$0xff]  ;;  %v283_v47 = vpack.c.bf16 %v270_v8, %v269_v43  ;;  %v2407_v50 = vld [vmem:[#allocation2 + $0x84] sm:$0xff]  ;;  %v644_v17 = vld [vmem:[#allocation2 + $0x1a] sm:$0xff]  ;;  %v789_v22 = vpack.c.bf16 %v269_v43, %v2388_v29 }
  0x6d   :  { %v400_v49 = vpack.c.bf16 %v387_v54, %v386_v44  ;;  %v2409_v51 = vld [vmem:[#allocation2 + $0x8c] sm:$0xff]  ;;  %v515_v16 = vld [vmem:[#allocation2 + $0x20] sm:$0xff]  ;;  %v520_v28 = vld [vmem:[#allocation2 + $0x58] sm:$0xff] }
  0x6e   :  { %v396_v60 = vld [vmem:[#allocation2 + $0x86] sm:$0xff]  ;;  %v397_v52 = vld [vmem:[#allocation2 + $0x8e] sm:$0xff]  ;;  %v388_v56 = vld [vmem:[#allocation2 + $0x36] sm:$0xff]  ;;  %v288_v11 = vpack.c.bf16 %v2409_v51, %v2407_v50  ;;  %v529_v20 = vpack.c.bf16 %v515_v16, %v514_v13 }
  0x6f   :  { %v271_v53 = vld [vmem:[#allocation2 + $0x34] sm:$0xff]  ;;  %v272_v55 = vld [vmem:[#allocation2 + $0x3c] sm:$0xff]  ;;  %v405_v15 = vpack.c.bf16 %v397_v52, %v396_v60  ;;  %v516_v12 = vld [vmem:[#allocation2 + $0x28] sm:$0xff] }
  0x70   :  { %v389_v57 = vld [vmem:[#allocation2 + $0x3e] sm:$0xff]  ;;  %v284_v58 = vpack.c.bf16 %v272_v55, %v271_v53  ;;  %v643_v2 = vld [vmem:[#allocation2 + $0x12] sm:$0xff]  ;;  %v646_v25 = vld [vmem:[#allocation2 + $0x2a] sm:$0xff]  ;;  %v790_v26 = vpack.c.bf16 %v271_v53, %v270_v8  ;;  %v793_v53 = vpack.c.bf16 %v2397_v40, %v2384_v19 }
  0x71   :  { %v401_v59 = vpack.c.bf16 %v389_v57, %v388_v56  ;;  %v658_v9 = vpack.c.bf16 %v643_v2, %v642_v1  ;;  %v645_v18 = vld [vmem:[#allocation2 + $0x22] sm:$0xff]  ;;  %v517_v23 = vld [vmem:[#allocation2 + $0x30] sm:$0xff]  ;;  %v518_v27 = vld [vmem:[#allocation2 + $0x38] sm:$0xff] }
  0x72   :  { %v659_v21 = vpack.c.bf16 %v645_v18, %v644_v17  ;;  %v647_v3 = vld [vmem:[#allocation2 + $0x32] sm:$0xff]  ;;  %v530_v14 = vpack.c.bf16 %v517_v23, %v516_v12  ;;  %v519_v30 = vld [vmem:[#allocation2 + $0x40] sm:$0xff]  ;;  %v656_v12 = vld [vmem:[#allocation2 + $0x8a] sm:$0xff] }
  0x73   :  { %v660_v0 = vpack.c.bf16 %v647_v3, %v646_v25  ;;  %v648_v31 = vld [vmem:[#allocation2 + $0x3a] sm:$0xff]  ;;  %v649_v32 = vld [vmem:[#allocation2 + $0x42] sm:$0xff]  ;;  %v531_v34 = vpack.c.bf16 %v519_v30, %v518_v27  ;;  %v523_v54 = vld [vmem:[#allocation2 + $0x70] sm:$0xff] }
  0x74   :  { %1805 = vmatmul.msk.bf16.gmra.mxu3 %vm47_vm0, %v403_v39  ;;  %v779_v33 = vld [vmem:[#allocation2 + $0x44] sm:$0xff]  ;;  %v661_v37 = vpack.c.bf16 %v649_v32, %v648_v31  ;;  %v650_v38 = vld [vmem:[#allocation2 + $0x5a] sm:$0xff]  ;;  %v657_v23 = vld [vmem:[#allocation2 + $0x92] sm:$0xff] }
  0x75   :  { %1785 = vmatmul.msk.bf16.gmra.mxu2 %vm47_vm0, %v286_v4  ;;  %v791_v24 = vpack.c.bf16 %v779_v33, %v272_v55  ;;  %v521_v29 = vld [vmem:[#allocation2 + $0x60] sm:$0xff]  ;;  %v787_v25 = vld [vmem:[#allocation2 + $0x94] sm:$0xff] }
  0x76   :  { %1801 = vmatmul.msk.bf16.gmra.mxu1 %vm47_vm0, %v399_v42  ;;  %v651_v36 = vld [vmem:[#allocation2 + $0x62] sm:$0xff]  ;;  %v532_v4 = vpack.c.bf16 %v521_v29, %v520_v28  ;;  %v2440_v41 = vld [vmem:[%s3012_s2] ss:$0 sm:$0xff] }
  0x77   :  { %1781 = vmatmul.msk.bf16.gmra.mxu0 %vm47_vm0, %v282_v5  ;;  %v662_v39 = vpack.c.bf16 %v651_v36, %v650_v38  ;;  %v792_v5 = vpack.c.bf16 %v2382_v35, %v2345_v63  ;;  %v522_v35 = vld [vmem:[#allocation2 + $0x68] sm:$0xff]  ;;  %v525_v61 = vld [vmem:[#allocation2 + $0x80] sm:$0xff] }
  0x78   :  { %v533_v60 = vpack.c.bf16 %v523_v54, %v522_v35  ;;  %v654_v62 = vld [vmem:[#allocation2 + $0x7a] sm:$0xff]  ;;  %v655_v1 = vld [vmem:[#allocation2 + $0x82] sm:$0xff] }
  0x84   :  { %1806 = vmatmul.msk.bf16.gmra.mxu3 %vm47_vm0, %v404_v46  ;;  %v653_v46 = vld [vmem:[#allocation2 + $0x72] sm:$0xff] }
  0x85   :  { %1786 = vmatmul.msk.bf16.gmra.mxu2 %vm47_vm0, %v287_v45  ;;  %v652_v45 = vld [vmem:[#allocation2 + $0x6a] sm:$0xff] }
  0x86   :  { %1802 = vmatmul.msk.bf16.gmra.mxu1 %vm47_vm0, %v400_v49  ;;  %v663_v52 = vpack.c.bf16 %v653_v46, %v652_v45 }
  0x87   :  { %1782 = vmatmul.msk.bf16.gmra.mxu0 %vm47_vm0, %v283_v47 }
  0x94   :  { %1807 = vmatmul.msk.bf16.gmra.mxu3 %vm47_vm0, %v405_v15 }
  0x95   :  { %1787 = vmatmul.msk.bf16.gmra.mxu2 %vm47_vm0, %v288_v11 }
  0x96   :  { %1803 = vmatmul.msk.bf16.gmra.mxu1 %vm47_vm0, %v401_v59  ;;  %v524_v59 = vld [vmem:[#allocation2 + $0x78] sm:$0xff] }
  0x97   :  { %1783 = vmatmul.msk.bf16.gmra.mxu0 %vm47_vm0, %v284_v58  ;;  %v534_v2 = vpack.c.bf16 %v525_v61, %v524_v59 }
  0xa4   :  { %1840 = vmatmul.msk.bf16.vlgmr.msrb.gmra.mxu3 %vm47_vm0, %v658_v9  ;;  %v794_v9 = vpack.c.bf16 %v2407_v50, %v2399_v48 }
  0xa5   :  { %1820 = vmatmul.msk.bf16.vlgmr.msrb.gmra.mxu2 %vm47_vm0, %v528_v6  ;;  %v664_v6 = vpack.c.bf16 %v655_v1, %v654_v62 }
  0xa7   :  { %1860 = vmatmul.msk.bf16.vlgmr.msrb.gmra.mxu0 %vm47_vm0, %v788_v10 }
  0xb4   :  { %1841 = vmatmul.msk.bf16.gmra.mxu3 %vm47_vm0, %v659_v21  ;;  %v526_v21 = vld [vmem:[#allocation2 + $0x88] sm:$0xff] }
  0xb5   :  { %1821 = vmatmul.msk.bf16.gmra.mxu2 %vm47_vm0, %v529_v20 }
  0xb7   :  { %1861 = vmatmul.msk.bf16.gmra.mxu0 %vm47_vm0, %v789_v22  ;;  %v527_v22 = vld [vmem:[#allocation2 + $0x90] sm:$0xff] }
  0xb8   :  { %v535_v3 = vpack.c.bf16 %v527_v22, %v526_v21 }
  0xc4   :  { %1842 = vmatmul.msk.bf16.gmra.mxu3 %vm47_vm0, %v660_v0  ;;  %v795_v0 = vpack.c.bf16 %v787_v25, %v2409_v51 }
  0xc5   :  { %1822 = vmatmul.msk.bf16.gmra.mxu2 %vm47_vm0, %v530_v14  ;;  %v665_v14 = vpack.c.bf16 %v657_v23, %v656_v12 }
  0xc7   :  { %1862 = vmatmul.msk.bf16.gmra.mxu0 %vm47_vm0, %v790_v26 }
  0xd4   :  { %1843 = vmatmul.msk.bf16.gmra.mxu3 %vm47_vm0, %v661_v37 }
  0xd5   :  { %1823 = vmatmul.msk.bf16.gmra.mxu2 %vm47_vm0, %v531_v34 }
  0xd7   :  { %1863 = vmatmul.msk.bf16.gmra.mxu0 %vm47_vm0, %v791_v24 }
  0xe3   :  { %v456_v34 = vpop.f32.mrf.mxu1 }
  0xe4   :  { %v2435_v42 = vpop.f32.mrf.mxu0  ;;  %1844 = vmatmul.msk.bf16.gmra.mxu3 %vm47_vm0, %v662_v39 }
  0xe5   :  { %1824 = vmatmul.msk.bf16.gmra.mxu2 %vm47_vm0, %v532_v4  ;;  %v343_v24 = vadd.f32 %v2440_v41, %v2435_v42 }
  0xe7   :  { %1864 = vmatmul.msk.bf16.gmra.mxu0 %vm47_vm0, %v792_v5  ;;  %v476_v43 = vpop.f32.mrf.mxu3  ;;  %v496_v29 = vadd.f32 %v456_v34, %v343_v24 }
  0xe8   :  { %v362_v7 = vpop.f32.mrf.mxu2 }
  0xe9   :  { %v363_v8 = vadd.f32 %v2440_v41, %v362_v7 }
  0xeb   :  { %v2446_v44 = vadd.f32 %v476_v43, %v363_v8  ;;  %v458_v38 = vpop.f32.mrf.mxu1 }
  0xec   :  { %v2448_v63 = vpop.f32.mrf.mxu0 }
  0xef   :  { %v2452_v49 = vpop.f32.mrf.mxu3 }
  0xf0   :  { %v2450_v47 = vpop.f32.mrf.mxu2 }
  0xf3   :  { %v461_v54 = vpop.f32.mrf.mxu1 }
  0xf4   :  { %v347_v55 = vpop.f32.mrf.mxu0  ;;  %1845 = vmatmul.msk.bf16.gmra.mxu3 %vm47_vm0, %v663_v52 }
  0xf5   :  { %1825 = vmatmul.msk.bf16.gmra.mxu2 %vm47_vm0, %v533_v60  ;;  %v348_v45 = vadd.f32 %v2440_v41, %v347_v55 }
  0xf7   :  { %1865 = vmatmul.msk.bf16.gmra.mxu0 %vm47_vm0, %v793_v53  ;;  %v481_v57 = vpop.f32.mrf.mxu3  ;;  %v498_v60 = vadd.f32 %v461_v54, %v348_v45 }
  0xf8   :  { %v367_v56 = vpop.f32.mrf.mxu2 }
  0xf9   :  { %v368_v11 = vadd.f32 %v2440_v41, %v367_v56 }
  0xfb   :  { %v2460_v15 = vadd.f32 %v481_v57, %v368_v11  ;;  %v463_v57 = vpop.f32.mrf.mxu1 }
  0xfc   :  { %v2462_v58 = vpop.f32.mrf.mxu0 }
  0xff   :  { %v2466_v40 = vpop.f32.mrf.mxu3 }
 0x100   :  { %v2464_v19 = vpop.f32.mrf.mxu2 }
 0x104   :  { %v352_v10 = vpop.f32.mrf.mxu0  ;;  %1846 = vmatmul.msk.bf16.gmra.mxu3 %vm47_vm0, %v664_v6  ;;  %v466_v6 = vpop.f32.mrf.mxu1 }
 0x105   :  { %1826 = vmatmul.msk.bf16.gmra.mxu2 %vm47_vm0, %v534_v2  ;;  %v353_v1 = vadd.f32 %v2440_v41, %v352_v10 }
 0x107   :  { %1866 = vmatmul.msk.bf16.gmra.mxu0 %vm47_vm0, %v794_v9  ;;  %v486_v16 = vpop.f32.mrf.mxu3  ;;  %v500_v9 = vadd.f32 %v466_v6, %v353_v1 }
 0x108   :  { %v372_v13 = vpop.f32.mrf.mxu2 }
 0x109   :  { %v373_v17 = vadd.f32 %v2440_v41, %v372_v13 }
 0x10b   :  { %v2474_v18 = vadd.f32 %v486_v16, %v373_v17 }
 0x10c   :  { %v2476_v20 = vpop.f32.mrf.mxu0 }
 0x10f   :  { %v2480_v50 = vpop.f32.mrf.mxu3 }
 0x110   :  { %v2478_v48 = vpop.f32.mrf.mxu2 }
 0x114   :  { %v2483_v26 = vpop.f32.mrf.mxu0  ;;  %1847 = vmatmul.msk.bf16.gmra.mxu3 %vm47_vm0, %v665_v14 }
 0x115   :  { %1827 = vmatmul.msk.bf16.gmra.mxu2 %vm47_vm0, %v535_v3  ;;  %v358_v1 = vadd.f32 %v2440_v41, %v2483_v26  ;;  %v370_v26 = vadd.f32 %v2440_v41, %v2464_v19 }
 0x117   :  { %1867 = vmatmul.msk.bf16.gmra.mxu0 %vm47_vm0, %v795_v0  ;;  %v491_v30 = vpop.f32.mrf.mxu3 }
 0x118   :  { %v377_v27 = vpop.f32.mrf.mxu2 }
 0x119   :  { %v378_v31 = vadd.f32 %v2440_v41, %v377_v27 }
 0x11b   :  { %v2489_v32 = vadd.f32 %v491_v30, %v378_v31 }
 0x11c   :  { %v2491_v33 = vpop.f32.mrf.mxu0 }
 0x11f   :  { %v2495_v51 = vpop.f32.mrf.mxu3 }
 0x120   :  { %v2493_v37 = vpop.f32.mrf.mxu2 }
 0x124   :  { %v846_v28 = vpop.f32.mrf.mxu0 }
 0x127   :  { %v716_v4 = vpop.f32.mrf.mxu3 }
 0x128   :  { %v586_v36 = vpop.f32.mrf.mxu2 }
 0x129   :  { %v626_v39 = vadd.f32 %v586_v36, %v496_v29 }
 0x12b   :  { %v756_v5 = vadd.f32 %v716_v4, %v626_v39  ;;  %v345_v39 = vadd.f32 %v2440_v41, %v2448_v63 }
 0x12c   :  { %v2499_v7 = vpop.f32.mrf.mxu0 }
 0x12d   :  { %v2501_v43 = vadd.f32 %v846_v28, %v756_v5  ;;  %v468_v28 = vpop.f32.mrf.mxu1 }
 0x12f   :  { %v718_v35 = vpop.f32.mrf.mxu3 }
 0x130   :  { %v588_v8 = vpop.f32.mrf.mxu2 }
 0x134   :  { %v851_v46 = vpop.f32.mrf.mxu0 }
 0x135   :  { %v471_v5 = vpop.f32.mrf.mxu1 }
 0x137   :  { %v721_v42 = vpop.f32.mrf.mxu3 }
 0x138   :  { %v591_v52 = vpop.f32.mrf.mxu2 }
 0x139   :  { %v628_v53 = vadd.f32 %v591_v52, %v498_v60  ;;  %v350_v60 = vadd.f32 %v2440_v41, %v2462_v58 }
 0x13b   :  { %v758_v56 = vadd.f32 %v721_v42, %v628_v53  ;;  %v355_v42 = vadd.f32 %v2440_v41, %v2476_v20 }
 0x13c   :  { %v853_v11 = vpop.f32.mrf.mxu0 }
 0x13d   :  { %v2504_v59 = vadd.f32 %v851_v46, %v758_v56  ;;  %v497_v46 = vadd.f32 %v458_v38, %v345_v39  ;;  %v499_v56 = vadd.f32 %v463_v57, %v350_v60  ;;  %v501_v6 = vadd.f32 %v468_v28, %v355_v42  ;;  %v473_v58 = vpop.f32.mrf.mxu1 }
 0x13e   :  { %v360_v38 = vadd.f32 %v2440_v41, %v2491_v33  ;;  %v365_v57 = vadd.f32 %v2440_v41, %v2450_v47  ;;  %v375_v33 = vadd.f32 %v2440_v41, %v2478_v48  ;;  %v939_v47 = vmul.f32 %v2501_v43, %v2501_v43 }
 0x13f   :  { %v723_v62 = vpop.f32.mrf.mxu3  ;;  %v627_v52 = vadd.f32 %v588_v8, %v497_v46  ;;  %v507_v46 = vadd.f32 %v2466_v40, %v370_v26  ;;  %v905_v40 = vsel %vm47_vm0, %v2504_v59, 0.0 }
 0x140   :  { %v593_v61 = vpop.f32.mrf.mxu2  ;;  %v505_v39 = vadd.f32 %v2452_v49, %v365_v57  ;;  %v902_v49 = vsel %vm47_vm0, %v2501_v43, 0.0 }
 0x141   :  { %v629_v63 = vadd.f32 %v593_v61, %v499_v56  ;;  %v955_v56 = vsel %vm47_vm0, %v939_v47, 0.0 }
 0x144   :  { %v856_v2 = vpop.f32.mrf.mxu0 }
 0x147   :  { %v726_v16 = vpop.f32.mrf.mxu3 }
 0x148   :  { %v596_v13 = vpop.f32.mrf.mxu2 }
 0x149   :  { %v630_v55 = vadd.f32 %v596_v13, %v500_v9 }
 0x14b   :  { %v760_v17 = vadd.f32 %v726_v16, %v630_v55  ;;  %v502_v16 = vadd.f32 %v471_v5, %v358_v1  ;;  %v759_v55 = vadd.f32 %v723_v62, %v629_v63 }
 0x14c   :  { %v858_v21 = vpop.f32.mrf.mxu0 }
 0x14d   :  { %v2507_v22 = vadd.f32 %v856_v2, %v760_v17  ;;  %v757_v2 = vadd.f32 %v718_v35, %v627_v52  ;;  %v503_v35 = vadd.f32 %v473_v58, %v360_v38 }
 0x14f   :  { %v728_v23 = vpop.f32.mrf.mxu3  ;;  %v2536_v20 = vadd.f32 %v2499_v7, %v757_v2  ;;  %v2548_v7 = vadd.f32 %v853_v11, %v759_v55 }
 0x150   :  { %v598_v12 = vpop.f32.mrf.mxu2 }
 0x151   :  { %v631_v8 = vadd.f32 %v598_v12, %v501_v6  ;;  %v940_v12 = vmul.f32 %v2536_v20, %v2536_v20  ;;  %v903_v48 = vsel %vm47_vm0, %v2536_v20, 0.0 }
 0x153   :  { %v761_v28 = vadd.f32 %v728_v23, %v631_v8  ;;  %v941_v23 = vmul.f32 %v2504_v59, %v2504_v59 }
 0x154   :  { %v2509_v25 = vpop.f32.mrf.mxu0 }
 0x155   :  { %v2562_v60 = vadd.f32 %v858_v21, %v761_v28  ;;  %v958_v21 = vsel %vm47_vm0, %v941_v23, 0.0 }
 0x157   :  { %v731_v14 = vpop.f32.mrf.mxu3 }
 0x158   :  { %v601_v3 = vpop.f32.mrf.mxu2 }
 0x159   :  { %v632_v61 = vadd.f32 %v601_v3, %v502_v16 }
 0x15b   :  { %v762_v11 = vadd.f32 %v731_v14, %v632_v61  ;;  %v904_v14 = vadd.f32 %v903_v48, %v902_v49 }
 0x15c   :  { %v2511_v0 = vpop.f32.mrf.mxu0 }
 0x15d   :  { %v2576_v2 = vadd.f32 %v2509_v25, %v762_v11  ;;  %v906_v38 = vadd.f32 %v905_v40, %v904_v14 }
 0x15f   :  { %v733_v10 = vpop.f32.mrf.mxu3 }
 0x160   :  { %v603_v27 = vpop.f32.mrf.mxu2 }
 0x161   :  { %v633_v62 = vadd.f32 %v603_v27, %v503_v35  ;;  %v509_v27 = vadd.f32 %v2480_v50, %v375_v33  ;;  %v943_v50 = vmul.f32 %v2507_v22, %v2507_v22  ;;  %v945_v33 = vmul.f32 %v2576_v2, %v2576_v2 }
 0x163   :  { %v763_v42 = vadd.f32 %v733_v10, %v633_v62  ;;  %v944_v10 = vmul.f32 %v2562_v60, %v2562_v60 }
 0x164   :  { %v2513_v30 = vpop.f32.mrf.mxu0 }
 0x165   :  { %v2585_v16 = vadd.f32 %v2511_v0, %v763_v42  ;;  %v964_v62 = vsel %vm47_vm0, %v944_v10, 0.0 }
 0x167   :  { %v736_v34 = vpop.f32.mrf.mxu3  ;;  %v946_v47 = vmul.f32 %v2585_v16, %v2585_v16 }
 0x168   :  { %v606_v31 = vpop.f32.mrf.mxu2 }
 0x169   :  { %v634_v19 = vadd.f32 %v606_v31, %v2446_v44  ;;  %v956_v44 = vsel %vm47_vm0, %v940_v12, 0.0  ;;  %v942_v31 = vmul.f32 %v2548_v7, %v2548_v7 }
 0x16a   :  { %v957_v6 = vadd.f32 %v956_v44, %v955_v56 }
 0x16b   :  { %v764_v1 = vadd.f32 %v736_v34, %v634_v19  ;;  %v960_v8 = vsel %vm47_vm0, %v942_v31, 0.0  ;;  %v909_v34 = vsel %vm47_vm0, %v2507_v22, 0.0 }
 0x16c   :  { %v2515_v24 = vpop.f32.mrf.mxu0  ;;  %v959_v25 = vadd.f32 %v958_v21, %v957_v6 }
 0x16e   :  { %v961_v28 = vadd.f32 %v960_v8, %v959_v25 }
 0x16f   :  { %v738_v36 = vpop.f32.mrf.mxu3 }
 0x170   :  { %v608_v29 = vpop.f32.mrf.mxu2 }
 0x171   :  { %v635_v52 = vadd.f32 %v608_v29, %v505_v39  ;;  %v907_v29 = vsel %vm47_vm0, %v2548_v7, 0.0 }
 0x172   :  { %v908_v26 = vadd.f32 %v907_v29, %v906_v38 }
 0x173   :  { %v765_v58 = vadd.f32 %v738_v36, %v635_v52  ;;  %v911_v36 = vsel %vm47_vm0, %v2562_v60, 0.0 }
 0x174   :  { %v2517_v4 = vpop.f32.mrf.mxu0  ;;  %v910_v12 = vadd.f32 %v909_v34, %v908_v26 }
 0x175   :  { %v2599_v39 = vadd.f32 %v2515_v24, %v765_v58  ;;  %v915_v24 = vsel %vm47_vm0, %v2585_v16, 0.0 }
 0x177   :  { %v2521_v45 = vpop.f32.mrf.mxu3 }
 0x178   :  { %v611_v54 = vpop.f32.mrf.mxu2 }
 0x179   :  { %v636_v63 = vadd.f32 %v611_v54, %v2460_v15  ;;  %v962_v15 = vsel %vm47_vm0, %v943_v50, 0.0  ;;  %v2589_v54 = vadd.f32 %v2513_v30, %v764_v1  ;;  %v913_v30 = vsel %vm47_vm0, %v2576_v2, 0.0 }
 0x17a   :  { %v963_v48 = vadd.f32 %v962_v15, %v961_v28  ;;  %v919_v50 = vsel %vm47_vm0, %v2599_v39, 0.0 }
 0x17b   :  { %v766_v0 = vadd.f32 %v2521_v45, %v636_v63  ;;  %v912_v45 = vadd.f32 %v911_v36, %v910_v12  ;;  %v917_v44 = vsel %vm47_vm0, %v2589_v54, 0.0 }
 0x17c   :  { %v2527_v53 = vpop.f32.mrf.mxu0  ;;  %v965_v49 = vadd.f32 %v964_v62, %v963_v48 }
 0x17d   :  { %v2612_v23 = vadd.f32 %v2517_v4, %v766_v0  ;;  %v914_v52 = vadd.f32 %v913_v30, %v912_v45 }
 0x17f   :  { %v2531_v13 = vpop.f32.mrf.mxu3  ;;  %v916_v56 = vadd.f32 %v915_v24, %v914_v52  ;;  %v949_v1 = vmul.f32 %v2612_v23, %v2612_v23  ;;  %v921_v58 = vsel %vm47_vm0, %v2612_v23, 0.0 }
 0x180   :  { %v613_v9 = vpop.f32.mrf.mxu2 }
 0x181   :  { %v637_v55 = vadd.f32 %v613_v9, %v507_v46  ;;  %v918_v6 = vadd.f32 %v917_v44, %v916_v56 }
 0x183   :  { %v767_v19 = vadd.f32 %v2531_v13, %v637_v55  ;;  %v948_v13 = vmul.f32 %v2599_v39, %v2599_v39  ;;  %v920_v25 = vadd.f32 %v919_v50, %v918_v6 }
 0x184   :  { %v2542_v17 = vpop.f32.mrf.mxu0 }
 0x185   :  { %v2620_v40 = vadd.f32 %v2527_v53, %v767_v19  ;;  %v380_v53 = vadd.f32 %v2440_v41, %v2493_v37  ;;  %v972_v38 = vsel %vm47_vm0, %v948_v13, 0.0 }
 0x187   :  { %v746_v5 = vpop.f32.mrf.mxu3  ;;  %v950_v8 = vmul.f32 %v2620_v40, %v2620_v40  ;;  %v923_v41 = vsel %vm47_vm0, %v2620_v40, 0.0 }
 0x188   :  { %v616_v3 = vpop.f32.mrf.mxu2 }
 0x189   :  { %v638_v9 = vadd.f32 %v616_v3, %v2474_v18  ;;  %v947_v18 = vmul.f32 %v2589_v54, %v2589_v54  ;;  %v966_v3 = vsel %vm47_vm0, %v945_v33, 0.0 }
 0x18a   :  { %v967_v42 = vadd.f32 %v966_v3, %v965_v49 }
 0x18b   :  { %v768_v11 = vadd.f32 %v746_v5, %v638_v9  ;;  %v970_v4 = vsel %vm47_vm0, %v947_v18, 0.0 }
 0x18c   :  { %v878_v57 = vpop.f32.mrf.mxu0 }
 0x18d   :  { %v2628_v21 = vadd.f32 %v2542_v17, %v768_v11 }
 0x18f   :  { %v748_v61 = vpop.f32.mrf.mxu3  ;;  %v951_v37 = vmul.f32 %v2628_v21, %v2628_v21  ;;  %v925_v36 = vsel %vm47_vm0, %v2628_v21, 0.0 }
 0x190   :  { %v618_v35 = vpop.f32.mrf.mxu2 }
 0x191   :  { %v639_v46 = vadd.f32 %v618_v35, %v509_v27  ;;  %v968_v27 = vsel %vm47_vm0, %v946_v47, 0.0  ;;  %v922_v35 = vadd.f32 %v921_v58, %v920_v25  ;;  %v978_v12 = vsel %vm47_vm0, %v951_v37, 0.0 }
 0x192   :  { %v969_v63 = vadd.f32 %v968_v27, %v967_v42 }
 0x193   :  { %v769_v31 = vadd.f32 %v748_v61, %v639_v46  ;;  %v511_v61 = vadd.f32 %v2495_v51, %v380_v53  ;;  %v924_v9 = vadd.f32 %v923_v41, %v922_v35  ;;  %v1977_v35 = vld [vmem:[%s3015_s5 + $0x18] sm:$0xff] }
 0x194   :  { %v881_v10 = vpop.f32.mrf.mxu0  ;;  %v971_v55 = vadd.f32 %v970_v4, %v969_v63  ;;  %1270 = vmatpush.bf16.msra.mxu2 %v1977_v35 }
 0x195   :  { %v2638_v34 = vadd.f32 %v878_v57, %v769_v31  ;;  %v976_v57 = vsel %vm47_vm0, %v950_v8, 0.0  ;;  %v926_v19 = vadd.f32 %v925_v36, %v924_v9  ;;  %v1974_v36 = vld [vmem:[%s3015_s5] sm:$0xff]  ;;  %v1980_v9 = vld [vmem:[%s3015_s5 + $0x30] sm:$0xff] }
 0x196   :  { %v973_v15 = vadd.f32 %v972_v38, %v971_v55 }
 0x197   :  { %v751_v5 = vpop.f32.mrf.mxu3  ;;  %v952_v33 = vmul.f32 %v2638_v34, %v2638_v34  ;;  %v927_v62 = vsel %vm47_vm0, %v2638_v34, 0.0 }
 0x198   :  { %v621_v14 = vpop.f32.mrf.mxu2  ;;  %v928_v24 = vadd.f32 %v927_v62, %v926_v19  ;;  %v996_v19 = vld [vmem:[%s3017_s7] sm:$0x1] }
 0x199   :  { %v640_v29 = vadd.f32 %v621_v14, %v2489_v32  ;;  %v974_v32 = vsel %vm47_vm0, %v949_v1, 0.0  ;;  %v980_v48 = vsel %vm47_vm0, %v952_v33, 0.0  ;;  %v1976_v33 = vld [vmem:[%s3015_s5 + $0x10] sm:$0xff] }
 0x19a   :  { %v975_v0 = vadd.f32 %v974_v32, %v973_v15  ;;  %v1975_v15 = vld [vmem:[%s3015_s5 + $0x8] sm:$0xff]  ;;  %1271 = vmatpush.bf16.msra.mxu2 %v1976_v33 }
 0x19b   :  { %v770_v17 = vadd.f32 %v751_v5, %v640_v29  ;;  %1156 = vmatpush.bf16.msrb.mxu1 %v1975_v15 }
 0x19c   :  { %v977_v47 = vadd.f32 %v976_v57, %v975_v0  ;;  %v883_v11 = vpop.f32.mrf.mxu0  ;;  %v1981_v57 = vld [vmem:[%s3015_s5 + $0x38] sm:$0xff]  ;;  %v1978_v0 = vld [vmem:[%s3015_s5 + $0x20] sm:$0xff] }
 0x19d   :  { %v2645_v26 = vadd.f32 %v881_v10, %v770_v17  ;;  %1530 = vmatpush.bf16.msra.mxu0 %v1981_v57 }
 0x19e   :  { %v979_v3 = vadd.f32 %v978_v12, %v977_v47 }
 0x19f   :  { %v953_v30 = vmul.f32 %v2645_v26, %v2645_v26  ;;  %v753_v46 = vpop.f32.mrf.mxu3  ;;  %v929_v45 = vsel %vm47_vm0, %v2645_v26, 0.0  ;;  %1157 = vmatpush.bf16.msrb.mxu1 %v1974_v36 }
 0x1a0   :  { %v623_v28 = vpop.f32.mrf.mxu2  ;;  %v981_v13 = vadd.f32 %v980_v48, %v979_v3  ;;  %v930_v27 = vadd.f32 %v929_v45, %v928_v24 }
 0x1a1   :  { %v641_v51 = vadd.f32 %v623_v28, %v511_v61  ;;  %v982_v49 = vsel %vm47_vm0, %v953_v30, 0.0  ;;  %v1979_v61 = vld [vmem:[%s3015_s5 + $0x28] sm:$0xff]  ;;  %1531 = vmatpush.bf16.msra.mxu0 %v1980_v9 }
 0x1a2   :  { %v983_v42 = vadd.f32 %v982_v49, %v981_v13  ;;  %1400 = vmatpush.bf16.msra.mxu3 %v1979_v61 }
 0x1a3   :  { %v771_v18 = vadd.f32 %v753_v46, %v641_v51  ;;  %v1983_v51 = vld [vmem:[%s3015_s5 + $0x48] sm:$0xff] }
 0x1a4   :  { %1660 = vmatpush.bf16.msra.mxu1 %v1983_v51 }
 0x1a5   :  { %v901_v52 = vadd.f32 %v883_v11, %v771_v18  ;;  %v1009_v18 = vld [vmem:[%s3018_s8] sm:$0x1] }
 0x1a6   :  { %1401 = vmatpush.bf16.msra.mxu3 %v1978_v0 }
 0x1a7   :  { %v931_v44 = vsel %vm47_vm0, %v901_v52, 0.0  ;;  %v954_v31 = vmul.f32 %v901_v52, %v901_v52 }
 0x1a8   :  { %v932_v56 = vadd.f32 %v931_v44, %v930_v27 }
 0x1a9   :  { %v984_v4 = vsel %vm47_vm0, %v954_v31, 0.0 }
 0x1aa   :  { %v933_v14 = vrot.slane %v932_v56, 4  ;;  %v985_v5 = vadd.f32 %v984_v4, %v983_v42 }
 0x1ac   :  { %v934_v50 = vadd.f32 %v933_v14, %v932_v56  ;;  %v986_v1 = vrot.slane %v985_v5, 4 }
 0x1ae   :  { %v935_v29 = vrot.slane %v934_v50, 2  ;;  %v987_v53 = vadd.f32 %v986_v1, %v985_v5 }
 0x1b0   :  { %v936_v63 = vadd.f32 %v935_v29, %v934_v50  ;;  %v988_v6 = vrot.slane %v987_v53, 2 }
 0x1b2   :  { %v937_v38 = vrot.slane %v936_v63, 1  ;;  %v989_v10 = vadd.f32 %v988_v6, %v987_v53 }
 0x1b4   :  { %v938_v58 = vadd.f32 %v937_v38, %v936_v63  ;;  %v990_v8 = vrot.slane %v989_v10, 1 }
 0x1b6   :  { %v991_v17 = vadd.f32 %v990_v8, %v989_v10  ;;  %v992_v55 = vmul.f32 0.0078125, %v938_v58 }
 0x1b8   :  { %v993_v25 = vmul.f32 0.0078125, %v991_v17  ;;  %v994_v32 = vmul.f32 %v992_v55, %v992_v55 }
 0x1ba   :  { %v995_v41 = vsub.f32 %v993_v25, %v994_v32 }
 0x1bc   :  { %v997_v37 = vadd.f32 1e-05, %v995_v41 }
 0x1be   :  { %1994 = vrsqrt.f32 %v997_v37  ;;  %vm1004_vm6 = vweird.f32 %v997_v37 }
 0x1c4   :  { %v1995_v28 = vpop.eup %1994 }
 0x1c5   :  { %v999_v12 = vmul.f32 %v1995_v28, %v997_v37  ;;  %vm1005_vm5 = vweird.f32 %v1995_v28 }
 0x1c6   :  { %vm1006_vm7 = vmor %vm1004_vm6, %vm1005_vm5 }
 0x1c7   :  { %v1000_v62 = vmul.f32 %v1995_v28, %v999_v12 }
 0x1c9   :  { %v1001_v30 = vmul.f32 0.5, %v1000_v62 }
 0x1cb   :  { %v1002_v47 = vsub.f32 1.5, %v1001_v30 }
 0x1cd   :  { %v1003_v46 = vmul.f32 %v1995_v28, %v1002_v47 }
 0x1cf   :  { %v1007_v48 = vsel %vm1006_vm7, %v1995_v28, %v1003_v46 }
 0x1d0   :  { %v1008_v45 = vmul.f32 %v1007_v48, %v996_v19 }
 0x1d2   :  { %v1010_v3 = vmul.f32 %v1008_v45, %v992_v55  ;;  %v1013_v24 = vperm.slane %v1008_v45, 0 }
 0x1d4   :  { %v1011_v11 = vsub.f32 %v1009_v18, %v1010_v3  ;;  %v1030_v49 = vmul.f32 %v1013_v24, %v901_v52  ;;  %v1015_v27 = vmul.f32 %v1013_v24, %v2501_v43  ;;  %v1016_v44 = vmul.f32 %v1013_v24, %v2536_v20 }
 0x1d5   :  { %v1017_v31 = vmul.f32 %v1013_v24, %v2504_v59  ;;  %v1018_v42 = vmul.f32 %v1013_v24, %v2548_v7  ;;  %v1019_v56 = vmul.f32 %v1013_v24, %v2507_v22  ;;  %v1020_v4 = vmul.f32 %v1013_v24, %v2562_v60 }
 0x1d6   :  { %v1032_v13 = vperm.slane %v1011_v11, 0  ;;  %v1021_v52 = vmul.f32 %v1013_v24, %v2576_v2  ;;  %v1022_v43 = vmul.f32 %v1013_v24, %v2585_v16  ;;  %v1023_v22 = vmul.f32 %v1013_v24, %v2589_v54 }
 0x1d7   :  { %v1024_v58 = vmul.f32 %v1013_v24, %v2599_v39  ;;  %v1025_v16 = vmul.f32 %v1013_v24, %v2612_v23  ;;  %v1029_v17 = vmul.f32 %v1013_v24, %v2645_v26  ;;  %v1026_v54 = vmul.f32 %v1013_v24, %v2620_v40 }
 0x1d8   :  { %v1049_v14 = vadd.f32 %v1032_v13, %v1030_v49  ;;  %v1034_v5 = vadd.f32 %v1032_v13, %v1015_v27  ;;  %v1035_v50 = vadd.f32 %v1032_v13, %v1016_v44  ;;  %v1036_v1 = vadd.f32 %v1032_v13, %v1017_v31 }
 0x1d9   :  { %v1037_v29 = vadd.f32 %v1032_v13, %v1018_v42  ;;  %v1038_v53 = vadd.f32 %v1032_v13, %v1019_v56  ;;  %v1039_v59 = vadd.f32 %v1032_v13, %v1020_v4  ;;  %v1040_v7 = vadd.f32 %v1032_v13, %v1021_v52 }
 0x1da   :  { %v1065_v63 = vmax.f32 %v1049_v14, 0.0  ;;  %v1050_v20 = vmax.f32 %v1034_v5, 0.0  ;;  %v1051_v6 = vmax.f32 %v1035_v50, 0.0  ;;  %v1052_v38 = vmax.f32 %v1036_v1, 0.0 }
 0x1db   :  { %v1053_v60 = vmax.f32 %v1037_v29, 0.0  ;;  %v1041_v10 = vadd.f32 %v1032_v13, %v1022_v43  ;;  %v1054_v8 = vmax.f32 %v1038_v53, 0.0  ;;  %v1042_v2 = vadd.f32 %v1032_v13, %v1023_v22 }
 0x1dc   :  { %1081 = vst.msk [vmem:[#allocation2 + $0x90] sm:$0xff] %vm47_vm0, %v1065_v63  ;;  %v1055_v55 = vmax.f32 %v1039_v59, 0.0  ;;  %v1043_v25 = vadd.f32 %v1032_v13, %v1024_v58  ;;  %v1056_v32 = vmax.f32 %v1040_v7, 0.0  ;;  %v1044_v41 = vadd.f32 %v1032_v13, %v1025_v16 }
 0x1dd   :  { %1066 = vst.msk [vmem:[#allocation2 + $0x8] sm:$0xff] %vm47_vm0, %v1050_v20  ;;  %v1027_v39 = vmul.f32 %v1013_v24, %v2628_v21  ;;  %v1048_v37 = vadd.f32 %v1032_v13, %v1029_v17  ;;  %v1057_v15 = vmax.f32 %v1041_v10, 0.0  ;;  %v1045_v35 = vadd.f32 %v1032_v13, %v1026_v54 }
 0x1de   :  { %1067 = vst.msk [vmem:[#allocation2 + $0x10] sm:$0xff] %vm47_vm0, %v1051_v6  ;;  %v1028_v23 = vmul.f32 %v1013_v24, %v2638_v34  ;;  %v1058_v26 = vmax.f32 %v1042_v2, 0.0  ;;  %v1059_v40 = vmax.f32 %v1043_v25, 0.0  ;;  %v1060_v36 = vmax.f32 %v1044_v41, 0.0  ;;  %v1982_v41 = vld [vmem:[%s3015_s5 + $0x40] sm:$0xff] }
 0x1df   :  { %1068 = vst.msk [vmem:[#allocation2 + $0x18] sm:$0xff] %vm47_vm0, %v1052_v38  ;;  %v1046_v61 = vadd.f32 %v1032_v13, %v1027_v39  ;;  %v1061_v9 = vmax.f32 %v1045_v35, 0.0  ;;  %v1064_v24 = vmax.f32 %v1048_v37, 0.0  ;;  %1661 = vmatpush.bf16.msra.mxu1 %v1982_v41 }
 0x1e0   :  { %1069 = vst.msk [vmem:[#allocation2 + $0x20] sm:$0xff] %vm47_vm0, %v1053_v60  ;;  %v1047_v57 = vadd.f32 %v1032_v13, %v1028_v23 }
 0x1e1   :  { %1070 = vst.msk [vmem:[#allocation2 + $0x28] sm:$0xff] %vm47_vm0, %v1054_v8  ;;  %v1062_v62 = vmax.f32 %v1046_v61, 0.0 }
 0x1e2   :  { %1071 = vst.msk [vmem:[#allocation2 + $0x30] sm:$0xff] %vm47_vm0, %v1055_v55  ;;  %v1063_v45 = vmax.f32 %v1047_v57, 0.0 }
 0x1e3   :  { %1072 = vst.msk [vmem:[#allocation2 + $0x38] sm:$0xff] %vm47_vm0, %v1056_v32 }
 0x1e4   :  { %v1082_v33 = vld [vmem:[#allocation2 + $0x4] sm:$0xff]  ;;  %1073 = vst.msk [vmem:[#allocation2 + $0x40] sm:$0xff] %vm47_vm0, %v1057_v15 }
 0x1e5   :  { %v1199_v21 = vld [vmem:[#allocation2 + $0x6] sm:$0xff]  ;;  %v1200_v34 = vld [vmem:[#allocation2 + $0xe] sm:$0xff]  ;;  %1074 = vst.msk [vmem:[#allocation2 + $0x58] sm:$0xff] %vm47_vm0, %v1058_v26 }
 0x1e6   :  { %v1329_v0 = vld [vmem:[#allocation2 + $0x8] sm:$0xff]  ;;  %v1330_v12 = vld [vmem:[#allocation2 + $0x10] sm:$0xff]  ;;  %v1215_v51 = vpack.c.bf16 %v1200_v34, %v1199_v21  ;;  %1075 = vst.msk [vmem:[#allocation2 + $0x60] sm:$0xff] %vm47_vm0, %v1059_v40  ;;  %v1331_v1 = vld [vmem:[#allocation2 + $0x18] sm:$0xff] }
 0x1e7   :  { %v2721_v28 = vld [vmem:[#allocation2 + $0xc] sm:$0xff]  ;;  %v1345_v47 = vpack.c.bf16 %v1330_v12, %v1329_v0  ;;  %v2725_v48 = vld [vmem:[#allocation2 + $0x14] sm:$0xff]  ;;  %v2728_v3 = vld [vmem:[#allocation2 + $0x1c] sm:$0xff]  ;;  %1076 = vst.msk [vmem:[#allocation2 + $0x68] sm:$0xff] %vm47_vm0, %v1060_v36 }
 0x1e8   :  { %v1098_v30 = vpack.c.bf16 %v2721_v28, %v1082_v33  ;;  %v1459_v19 = vld [vmem:[#allocation2 + $0xa] sm:$0xff]  ;;  %v1460_v46 = vld [vmem:[#allocation2 + $0x12] sm:$0xff]  ;;  %v1605_v11 = vpack.c.bf16 %v2725_v48, %v2721_v28  ;;  %1896 = vmatmul.msk.bf16.vlgmr.msra.gmra.mxu2 %vm47_vm0, %v1215_v51  ;;  %1077 = vst.msk [vmem:[#allocation2 + $0x70] sm:$0xff] %vm47_vm0, %v1061_v9  ;;  %v1202_v14 = vld [vmem:[#allocation2 + $0x1e] sm:$0xff]  ;;  %v1099_v6 = vpack.c.bf16 %v2728_v3, %v2725_v48 }
 0x1e9   :  { %v1475_v18 = vpack.c.bf16 %v1460_v46, %v1459_v19  ;;  %1916 = vmatmul.msk.bf16.vlgmr.msra.gmra.mxu3 %vm47_vm0, %v1345_v47  ;;  %v2738_v49 = vld [vmem:[#allocation2 + $0x24] sm:$0xff]  ;;  %1078 = vst.msk [vmem:[#allocation2 + $0x78] sm:$0xff] %vm47_vm0, %v1062_v62  ;;  %v2741_v13 = vld [vmem:[#allocation2 + $0x2c] sm:$0xff]  ;;  %v1201_v4 = vld [vmem:[#allocation2 + $0x16] sm:$0xff] }
 0x1ea   :  { %1876 = vmatmul.msk.bf16.vlgmr.msrb.gmra.mxu1 %vm47_vm0, %v1098_v30  ;;  %1079 = vst.msk [vmem:[#allocation2 + $0x80] sm:$0xff] %vm47_vm0, %v1063_v45  ;;  %v1606_v27 = vpack.c.bf16 %v2738_v49, %v2728_v3  ;;  %v2747_v44 = vld [vmem:[#allocation2 + $0x34] sm:$0xff]  ;;  %v1332_v29 = vld [vmem:[#allocation2 + $0x20] sm:$0xff]  ;;  %v1216_v59 = vpack.c.bf16 %v1202_v14, %v1201_v4  ;;  %v1333_v8 = vld [vmem:[#allocation2 + $0x28] sm:$0xff]  ;;  %v1100_v55 = vpack.c.bf16 %v2741_v13, %v2738_v49 }
 0x1eb   :  { %1936 = vmatmul.msk.bf16.vlgmr.msra.gmra.mxu0 %vm47_vm0, %v1475_v18  ;;  %1080 = vst.msk [vmem:[#allocation2 + $0x88] sm:$0xff] %vm47_vm0, %v1064_v24  ;;  %v1607_v31 = vpack.c.bf16 %v2747_v44, %v2741_v13  ;;  %v1461_v53 = vld [vmem:[#allocation2 + $0x1a] sm:$0xff]  ;;  %v1462_v52 = vld [vmem:[#allocation2 + $0x22] sm:$0xff]  ;;  %v1346_v7 = vpack.c.bf16 %v1332_v29, %v1331_v1  ;;  %v1204_v58 = vld [vmem:[#allocation2 + $0x2e] sm:$0xff] }
 0x1ec   :  { %v1476_v22 = vpack.c.bf16 %v1462_v52, %v1461_v53  ;;  %v1203_v10 = vld [vmem:[#allocation2 + $0x26] sm:$0xff]  ;;  %v1334_v2 = vld [vmem:[#allocation2 + $0x30] sm:$0xff]  ;;  %v2784_v39 = vld [vmem:[#allocation2 + $0x3c] sm:$0xff] }
 0x1ed   :  { %v2751_v42 = vld [vmem:[#allocation2 + $0x5c] sm:$0xff]  ;;  %v1463_v16 = vld [vmem:[#allocation2 + $0x2a] sm:$0xff]  ;;  %v1464_v17 = vld [vmem:[#allocation2 + $0x32] sm:$0xff]  ;;  %v1217_v25 = vpack.c.bf16 %v1204_v58, %v1203_v10  ;;  %v1347_v54 = vpack.c.bf16 %v1334_v2, %v1333_v8  ;;  %v1101_v40 = vpack.c.bf16 %v2784_v39, %v2747_v44 }
 0x1ee   :  { %v2753_v56 = vld [vmem:[#allocation2 + $0x64] sm:$0xff]  ;;  %v1477_v32 = vpack.c.bf16 %v1464_v17, %v1463_v16  ;;  %v1205_v37 = vld [vmem:[#allocation2 + $0x36] sm:$0xff] }
 0x1ef   :  { %v2755_v5 = vld [vmem:[#allocation2 + $0x6c] sm:$0xff]  ;;  %v1609_v50 = vpack.c.bf16 %v2753_v56, %v2751_v42  ;;  %v1206_v15 = vld [vmem:[#allocation2 + $0x3e] sm:$0xff]  ;;  %v1090_v21 = vld [vmem:[#allocation2 + $0x54] sm:$0xff] }
 0x1f0   :  { %v2759_v43 = vld [vmem:[#allocation2 + $0x74] sm:$0xff]  ;;  %v1336_v23 = vld [vmem:[#allocation2 + $0x40] sm:$0xff]  ;;  %v1218_v57 = vpack.c.bf16 %v1206_v15, %v1205_v37  ;;  %v1102_v51 = vpack.c.bf16 %v2751_v42, %v1090_v21  ;;  %v1339_v24 = vld [vmem:[#allocation2 + $0x68] sm:$0xff]  ;;  %v1103_v29 = vpack.c.bf16 %v2755_v5, %v2753_v56 }
 0x1f1   :  { %v2761_v63 = vld [vmem:[#allocation2 + $0x7c] sm:$0xff]  ;;  %v1610_v20 = vpack.c.bf16 %v2759_v43, %v2755_v5  ;;  %v1209_v45 = vld [vmem:[#allocation2 + $0x66] sm:$0xff]  ;;  %v1210_v18 = vld [vmem:[#allocation2 + $0x6e] sm:$0xff] }
 0x1f2   :  { %v2767_v38 = vld [vmem:[#allocation2 + $0x84] sm:$0xff]  ;;  %v1335_v35 = vld [vmem:[#allocation2 + $0x38] sm:$0xff]  ;;  %v1340_v4 = vld [vmem:[#allocation2 + $0x70] sm:$0xff]  ;;  %v1220_v53 = vpack.c.bf16 %v1210_v18, %v1209_v45  ;;  %v1104_v2 = vpack.c.bf16 %v2761_v63, %v2759_v43 }
 0x1f3   :  { %v1611_v60 = vpack.c.bf16 %v2767_v38, %v2761_v63  ;;  %v1465_v26 = vld [vmem:[#allocation2 + $0x3a] sm:$0xff]  ;;  %v1466_v61 = vld [vmem:[#allocation2 + $0x42] sm:$0xff]  ;;  %v1348_v36 = vpack.c.bf16 %v1336_v23, %v1335_v35  ;;  %v1469_v14 = vld [vmem:[#allocation2 + $0x6a] sm:$0xff]  ;;  %v1350_v52 = vpack.c.bf16 %v1340_v4, %v1339_v24 }
 0x1f4   :  { %v1478_v33 = vpack.c.bf16 %v1466_v61, %v1465_v26  ;;  %v1207_v0 = vld [vmem:[#allocation2 + $0x56] sm:$0xff]  ;;  %v1208_v9 = vld [vmem:[#allocation2 + $0x5e] sm:$0xff]  ;;  %v1214_v41 = vld [vmem:[#allocation2 + $0x8e] sm:$0xff] }
 0x1f5   :  { %v1337_v34 = vld [vmem:[#allocation2 + $0x58] sm:$0xff]  ;;  %v1338_v12 = vld [vmem:[#allocation2 + $0x60] sm:$0xff]  ;;  %v1219_v47 = vpack.c.bf16 %v1208_v9, %v1207_v0  ;;  %v1343_v37 = vld [vmem:[#allocation2 + $0x88] sm:$0xff] }
 0x1f6   :  { %v1467_v62 = vld [vmem:[#allocation2 + $0x5a] sm:$0xff]  ;;  %v1468_v30 = vld [vmem:[#allocation2 + $0x62] sm:$0xff]  ;;  %v1349_v19 = vpack.c.bf16 %v1338_v12, %v1337_v34  ;;  %v1470_v1 = vld [vmem:[#allocation2 + $0x72] sm:$0xff] }
 0x1f7   :  { %v1479_v46 = vpack.c.bf16 %v1468_v30, %v1467_v62  ;;  %v1342_v10 = vld [vmem:[#allocation2 + $0x80] sm:$0xff]  ;;  %v1473_v15 = vld [vmem:[#allocation2 + $0x8a] sm:$0xff]  ;;  %v1474_v35 = vld [vmem:[#allocation2 + $0x92] sm:$0xff] }
 0x1f8   :  { %1897 = vmatmul.msk.bf16.gmra.mxu2 %vm47_vm0, %v1216_v59  ;;  %v1211_v59 = vld [vmem:[#allocation2 + $0x76] sm:$0xff]  ;;  %v1472_v8 = vld [vmem:[#allocation2 + $0x82] sm:$0xff] }
 0x1f9   :  { %1917 = vmatmul.msk.bf16.gmra.mxu3 %vm47_vm0, %v1346_v7  ;;  %v1212_v7 = vld [vmem:[#allocation2 + $0x7e] sm:$0xff]  ;;  %v1604_v43 = vld [vmem:[#allocation2 + $0x94] sm:$0xff] }
 0x1fa   :  { %1877 = vmatmul.msk.bf16.gmra.mxu1 %vm47_vm0, %v1099_v6  ;;  %v1480_v6 = vpack.c.bf16 %v1470_v1, %v1469_v14  ;;  %v1471_v58 = vld [vmem:[#allocation2 + $0x7a] sm:$0xff]  ;;  %v1221_v16 = vpack.c.bf16 %v1212_v7, %v1211_v59  ;;  %v1596_v28 = vld [vmem:[#allocation2 + $0x44] sm:$0xff] }
 0x1fb   :  { %1937 = vmatmul.msk.bf16.gmra.mxu0 %vm47_vm0, %v1476_v22  ;;  %v1341_v22 = vld [vmem:[#allocation2 + $0x78] sm:$0xff] }
 0x1fc   :  { %v1351_v17 = vpack.c.bf16 %v1342_v10, %v1341_v22 }
 0x208   :  { %1898 = vmatmul.msk.bf16.gmra.mxu2 %vm47_vm0, %v1217_v25  ;;  %v1344_v25 = vld [vmem:[#allocation2 + $0x90] sm:$0xff] }
 0x209   :  { %1918 = vmatmul.msk.bf16.gmra.mxu3 %vm47_vm0, %v1347_v54  ;;  %v1097_v54 = vld [vmem:[#allocation2 + $0x8c] sm:$0xff]  ;;  %v1352_v61 = vpack.c.bf16 %v1344_v25, %v1343_v37 }
 0x20a   :  { %1878 = vmatmul.msk.bf16.gmra.mxu1 %vm47_vm0, %v1100_v55  ;;  %v1481_v55 = vpack.c.bf16 %v1472_v8, %v1471_v58  ;;  %v1105_v23 = vpack.c.bf16 %v1097_v54, %v2767_v38 }
 0x20b   :  { %1938 = vmatmul.msk.bf16.gmra.mxu0 %vm47_vm0, %v1477_v32  ;;  %v1213_v32 = vld [vmem:[#allocation2 + $0x86] sm:$0xff] }
 0x20c   :  { %v1222_v26 = vpack.c.bf16 %v1214_v41, %v1213_v32 }
 0x218   :  { %1899 = vmatmul.msk.bf16.gmra.mxu2 %vm47_vm0, %v1218_v57 }
 0x219   :  { %1919 = vmatmul.msk.bf16.gmra.mxu3 %vm47_vm0, %v1348_v36 }
 0x21a   :  { %1879 = vmatmul.msk.bf16.gmra.mxu1 %vm47_vm0, %v1101_v40  ;;  %v1482_v40 = vpack.c.bf16 %v1474_v35, %v1473_v15 }
 0x21b   :  { %1939 = vmatmul.msk.bf16.gmra.mxu0 %vm47_vm0, %v1478_v33 }
 0x228   :  { %1900 = vmatmul.msk.bf16.gmra.mxu2 %vm47_vm0, %v1219_v47  ;;  %v1612_v47 = vpack.c.bf16 %v1604_v43, %v1097_v54 }
 0x229   :  { %1920 = vmatmul.msk.bf16.gmra.mxu3 %vm47_vm0, %v1349_v19 }
 0x22a   :  { %1880 = vmatmul.msk.bf16.gmra.mxu1 %vm47_vm0, %v1102_v51  ;;  %v2865_v51 = vld [vmem:[%s3016_s6] ss:$0 sm:$0xff] }
 0x22b   :  { %1940 = vmatmul.msk.bf16.gmra.mxu0 %vm47_vm0, %v1479_v46 }
 0x238   :  { %1901 = vmatmul.msk.bf16.gmra.mxu2 %vm47_vm0, %v1220_v53 }
 0x239   :  { %1921 = vmatmul.msk.bf16.gmra.mxu3 %vm47_vm0, %v1350_v52  ;;  %v1719_v52 = vld [vmem:[%s3010_s0] sm:$0xff] }
 0x23a   :  { %1881 = vmatmul.msk.bf16.gmra.mxu1 %vm47_vm0, %v1103_v29 }
 0x23b   :  { %1941 = vmatmul.msk.bf16.gmra.mxu0 %vm47_vm0, %v1480_v6 }
 0x248   :  { %1902 = vmatmul.msk.bf16.gmra.mxu2 %vm47_vm0, %v1221_v16 }
 0x249   :  { %1922 = vmatmul.msk.bf16.gmra.mxu3 %vm47_vm0, %v1351_v17 }
 0x24a   :  { %1882 = vmatmul.msk.bf16.gmra.mxu1 %vm47_vm0, %v1104_v2 }
 0x24b   :  { %1942 = vmatmul.msk.bf16.gmra.mxu0 %vm47_vm0, %v1481_v55  ;;  %v1720_v55 = vld [vmem:[%s3010_s0 + $0x8] sm:$0xff] }
 0x258   :  { %1903 = vmatmul.msk.bf16.gmra.mxu2 %vm47_vm0, %v1222_v26  ;;  %v1721_v26 = vld [vmem:[%s3010_s0 + $0x10] sm:$0xff] }
 0x259   :  { %1923 = vmatmul.msk.bf16.gmra.mxu3 %vm47_vm0, %v1352_v61 }
 0x25a   :  { %1883 = vmatmul.msk.bf16.gmra.mxu1 %vm47_vm0, %v1105_v23 }
 0x25b   :  { %1943 = vmatmul.msk.bf16.gmra.mxu0 %vm47_vm0, %v1482_v40 }
 0x267   :  { %v1159_v57 = vpop.f32.mrf.mxu1 }
 0x268   :  { %v1533_v34 = vpop.f32.mrf.mxu0  ;;  %v1160_v38 = vadd.f32 %v2865_v51, %v1159_v57 }
 0x26a   :  { %1956 = vmatmul.msk.bf16.vlgmr.msra.gmra.mxu1 %vm47_vm0, %v1605_v11  ;;  %v1608_v11 = vpack.c.bf16 %v1596_v28, %v2784_v39 }
 0x26b   :  { %v1273_v44 = vpop.f32.mrf.mxu2 }
 0x26c   :  { %v1403_v39 = vpop.f32.mrf.mxu3 }
 0x26f   :  { %v1161_v36 = vpop.f32.mrf.mxu1 }
 0x270   :  { %v1162_v24 = vadd.f32 %v2865_v51, %v1161_v36 }
 0x273   :  { %v1275_v12 = vpop.f32.mrf.mxu2 }
 0x274   :  { %v1405_v42 = vpop.f32.mrf.mxu3  ;;  %v1314_v1 = vadd.f32 %v1275_v12, %v1162_v24 }
 0x276   :  { %v1444_v59 = vadd.f32 %v1405_v42, %v1314_v1 }
 0x277   :  { %v1164_v33 = vpop.f32.mrf.mxu1 }
 0x278   :  { %v1165_v10 = vadd.f32 %v2865_v51, %v1164_v33 }
 0x27a   :  { %1957 = vmatmul.msk.bf16.gmra.mxu1 %vm47_vm0, %v1606_v27 }
 0x27b   :  { %v1278_v5 = vpop.f32.mrf.mxu2 }
 0x27c   :  { %v1315_v58 = vadd.f32 %v1278_v5, %v1165_v10 }
 0x27f   :  { %v1166_v21 = vpop.f32.mrf.mxu1 }
 0x280   :  { %v1167_v41 = vadd.f32 %v2865_v51, %v1166_v21 }
 0x283   :  { %v1280_v63 = vpop.f32.mrf.mxu2 }
 0x284   :  { %v1316_v15 = vadd.f32 %v1280_v63, %v1167_v41  ;;  %v1723_v63 = vld [vmem:[%s3010_s0 + $0x20] sm:$0xff] }
 0x287   :  { %v2822_v0 = vpop.f32.mrf.mxu1 }
 0x288   :  { %v1170_v21 = vadd.f32 %v2865_v51, %v2822_v0 }
 0x28a   :  { %1958 = vmatmul.msk.bf16.gmra.mxu1 %vm47_vm0, %v1607_v31 }
 0x28b   :  { %v1283_v14 = vpop.f32.mrf.mxu2 }
 0x28c   :  { %v1317_v28 = vadd.f32 %v1283_v14, %v1170_v21 }
 0x28f   :  { %v2828_v9 = vpop.f32.mrf.mxu1 }
 0x290   :  { %v1172_v0 = vadd.f32 %v2865_v51, %v2828_v9 }
 0x293   :  { %v1285_v16 = vpop.f32.mrf.mxu2 }
 0x297   :  { %v2830_v48 = vpop.f32.mrf.mxu1 }
 0x298   :  { %v1175_v24 = vadd.f32 %v2865_v51, %v2830_v48 }
 0x29a   :  { %1959 = vmatmul.msk.bf16.gmra.mxu1 %vm47_vm0, %v1608_v11 }
 0x29b   :  { %v1288_v57 = vpop.f32.mrf.mxu2 }
 0x29c   :  { %v1319_v14 = vadd.f32 %v1288_v57, %v1175_v24  ;;  %v1729_v24 = vld [vmem:[%s3010_s0 + $0x50] sm:$0xff] }
 0x29f   :  { %v2834_v3 = vpop.f32.mrf.mxu1 }
 0x2a0   :  { %v1177_v48 = vadd.f32 %v2865_v51, %v2834_v3 }
 0x2a3   :  { %v1290_v43 = vpop.f32.mrf.mxu2 }
 0x2a7   :  { %v2836_v49 = vpop.f32.mrf.mxu1 }
 0x2a8   :  { %v1180_v3 = vadd.f32 %v2865_v51, %v2836_v49 }
 0x2aa   :  { %1960 = vmatmul.msk.bf16.gmra.mxu1 %vm47_vm0, %v1609_v50  ;;  %v1535_v50 = vpop.f32.mrf.mxu0 }
 0x2ab   :  { %v1574_v2 = vadd.f32 %v1535_v50, %v1444_v59 }
 0x2af   :  { %v2842_v13 = vpop.f32.mrf.mxu1 }
 0x2b0   :  { %v1182_v49 = vadd.f32 %v2865_v51, %v2842_v13 }
 0x2b2   :  { %v1538_v19 = vpop.f32.mrf.mxu0 }
 0x2b7   :  { %v2844_v27 = vpop.f32.mrf.mxu1 }
 0x2b8   :  { %v1185_v13 = vadd.f32 %v2865_v51, %v2844_v27 }
 0x2ba   :  { %1961 = vmatmul.msk.bf16.gmra.mxu1 %vm47_vm0, %v1610_v20  ;;  %v1408_v20 = vpop.f32.mrf.mxu3  ;;  %v1540_v4 = vpop.f32.mrf.mxu0 }
 0x2bb   :  { %v1445_v54 = vadd.f32 %v1408_v20, %v1315_v58  ;;  %v1318_v20 = vadd.f32 %v1285_v16, %v1172_v0  ;;  %v1725_v16 = vld [vmem:[%s3010_s0 + $0x30] sm:$0xff] }
 0x2bd   :  { %v1575_v35 = vadd.f32 %v1538_v19, %v1445_v54 }
 0x2bf   :  { %v2850_v31 = vpop.f32.mrf.mxu1 }
 0x2c2   :  { %v1410_v45 = vpop.f32.mrf.mxu3  ;;  %v1543_v8 = vpop.f32.mrf.mxu0 }
 0x2c3   :  { %v1446_v36 = vadd.f32 %v1410_v45, %v1316_v15  ;;  %v1726_v15 = vld [vmem:[%s3010_s0 + $0x38] sm:$0xff] }
 0x2c5   :  { %v1576_v11 = vadd.f32 %v1540_v4, %v1446_v36  ;;  %v1293_v4 = vpop.f32.mrf.mxu2 }
 0x2c7   :  { %v2852_v62 = vpop.f32.mrf.mxu1 }
 0x2ca   :  { %1962 = vmatmul.msk.bf16.gmra.mxu1 %vm47_vm0, %v1611_v60  ;;  %v1313_v60 = vadd.f32 %v1273_v44, %v1160_v38  ;;  %v1413_v22 = vpop.f32.mrf.mxu3  ;;  %v1545_v61 = vpop.f32.mrf.mxu0 }
 0x2cb   :  { %v1447_v42 = vadd.f32 %v1413_v22, %v1317_v28  ;;  %v1320_v22 = vadd.f32 %v1290_v43, %v1177_v48  ;;  %v1727_v28 = vld [vmem:[%s3010_s0 + $0x40] sm:$0xff]  ;;  %v1728_v43 = vld [vmem:[%s3010_s0 + $0x48] sm:$0xff] }
 0x2cc   :  { %v1443_v18 = vadd.f32 %v1403_v39, %v1313_v60 }
 0x2ce   :  { %v1573_v29 = vadd.f32 %v1533_v34, %v1443_v18  ;;  %v1722_v34 = vld [vmem:[%s3010_s0 + $0x18] sm:$0xff] }
 0x2cf   :  { %v2858_v56 = vpop.f32.mrf.mxu1 }
 0x2d2   :  { %v1415_v37 = vpop.f32.mrf.mxu3  ;;  %v1548_v50 = vpop.f32.mrf.mxu0 }
 0x2d3   :  { %v1448_v45 = vadd.f32 %v1415_v37, %v1318_v20 }
 0x2d5   :  { %v1578_v1 = vadd.f32 %v1545_v61, %v1448_v45 }
 0x2d7   :  { %v2860_v30 = vpop.f32.mrf.mxu1 }
 0x2da   :  { %1963 = vmatmul.msk.bf16.gmra.mxu1 %vm47_vm0, %v1612_v47  ;;  %v1418_v44 = vpop.f32.mrf.mxu3  ;;  %v1577_v47 = vadd.f32 %v1543_v8, %v1447_v42  ;;  %v1550_v9 = vpop.f32.mrf.mxu0 }
 0x2db   :  { %v1295_v8 = vpop.f32.mrf.mxu2 }
 0x2dc   :  { %v1322_v57 = vadd.f32 %v1295_v8, %v1182_v49 }
 0x2df   :  { %v2869_v46 = vpop.f32.mrf.mxu1 }
 0x2e2   :  { %v1420_v60 = vpop.f32.mrf.mxu3  ;;  %v1553_v10 = vpop.f32.mrf.mxu0 }
 0x2e7   :  { %v1663_v53 = vpop.f32.mrf.mxu1 }
 0x2e8   :  { %v1703_v6 = vadd.f32 %v1663_v53, %v1573_v29  ;;  %v1724_v53 = vld [vmem:[%s3010_s0 + $0x28] sm:$0xff] }
 0x2ea   :  { %v1735_v7 = vadd.f32 %v1719_v52, %v1703_v6  ;;  %v1449_v6 = vadd.f32 %v1418_v44, %v1319_v14 }
 0x2ec   :  { %1751 = vst.msk [vmem:[%s3019_s9] sm:$0xff] %vm47_vm0, %v1735_v7  ;;  %v1423_v7 = vpop.f32.mrf.mxu3  ;;  %v1579_v58 = vadd.f32 %v1548_v50, %v1449_v6 }
 0x2ef   :  { %v1665_v17 = vpop.f32.mrf.mxu1 }
 0x2f0   :  { %v1704_v25 = vadd.f32 %v1665_v17, %v1574_v2 }
 0x2f2   :  { %v1736_v32 = vadd.f32 %v1720_v55, %v1704_v25  ;;  %v1450_v55 = vadd.f32 %v1420_v60, %v1320_v22 }
 0x2f4   :  { %1752 = vst.msk [vmem:[%s3019_s9 + $0x8] sm:$0xff] %vm47_vm0, %v1736_v32  ;;  %v1425_v54 = vpop.f32.mrf.mxu3  ;;  %v1321_v32 = vadd.f32 %v1293_v4, %v1180_v3  ;;  %v1580_v41 = vadd.f32 %v1550_v9, %v1450_v55 }
 0x2f5   :  { %v1452_v44 = vadd.f32 %v1425_v54, %v1322_v57 }
 0x2f6   :  { %v1451_v61 = vadd.f32 %v1423_v7, %v1321_v32  ;;  %v1730_v7 = vld [vmem:[%s3010_s0 + $0x58] sm:$0xff] }
 0x2f7   :  { %v1668_v23 = vpop.f32.mrf.mxu1 }
 0x2f8   :  { %v1705_v40 = vadd.f32 %v1668_v23, %v1575_v35  ;;  %v1555_v35 = vpop.f32.mrf.mxu0  ;;  %v1581_v36 = vadd.f32 %v1553_v10, %v1451_v61 }
 0x2f9   :  { %v1582_v50 = vadd.f32 %v1555_v35, %v1452_v44 }
 0x2fa   :  { %v1737_v33 = vadd.f32 %v1721_v26, %v1705_v40  ;;  %v1298_v26 = vpop.f32.mrf.mxu2 }
 0x2fb   :  { %v1323_v42 = vadd.f32 %v1298_v26, %v1185_v13  ;;  %v1734_v13 = vld [vmem:[%s3010_s0 + $0x78] sm:$0xff] }
 0x2fc   :  { %1753 = vst.msk [vmem:[%s3019_s9 + $0x10] sm:$0xff] %vm47_vm0, %v1737_v33  ;;  %v1428_v33 = vpop.f32.mrf.mxu3 }
 0x2ff   :  { %v1670_v39 = vpop.f32.mrf.mxu1 }
 0x300   :  { %v1706_v12 = vadd.f32 %v1670_v39, %v1576_v11  ;;  %v1558_v39 = vpop.f32.mrf.mxu0 }
 0x302   :  { %v1738_v5 = vadd.f32 %v1722_v34, %v1706_v12  ;;  %v1300_v12 = vpop.f32.mrf.mxu2 }
 0x304   :  { %1754 = vst.msk [vmem:[%s3019_s9 + $0x18] sm:$0xff] %vm47_vm0, %v1738_v5  ;;  %v1430_v20 = vpop.f32.mrf.mxu3 }
 0x307   :  { %v1673_v19 = vpop.f32.mrf.mxu1 }
 0x308   :  { %v1707_v38 = vadd.f32 %v1673_v19, %v1577_v47  ;;  %v1453_v47 = vadd.f32 %v1428_v33, %v1323_v42  ;;  %v1560_v27 = vpop.f32.mrf.mxu0 }
 0x30a   :  { %v1739_v18 = vadd.f32 %v1723_v63, %v1707_v38  ;;  %v1187_v63 = vadd.f32 %v2865_v51, %v2850_v31  ;;  %v1303_v38 = vpop.f32.mrf.mxu2  ;;  %v1583_v45 = vadd.f32 %v1558_v39, %v1453_v47  ;;  %v1190_v31 = vadd.f32 %v2865_v51, %v2852_v62 }
 0x30b   :  { %v1192_v62 = vadd.f32 %v2865_v51, %v2858_v56  ;;  %v1195_v56 = vadd.f32 %v2865_v51, %v2860_v30  ;;  %v1197_v30 = vadd.f32 %v2865_v51, %v2869_v46 }
 0x30c   :  { %1755 = vst.msk [vmem:[%s3019_s9 + $0x20] sm:$0xff] %vm47_vm0, %v1739_v18  ;;  %v1324_v60 = vadd.f32 %v1300_v12, %v1187_v63 }
 0x30e   :  { %v1454_v4 = vadd.f32 %v1430_v20, %v1324_v60 }
 0x30f   :  { %v1675_v29 = vpop.f32.mrf.mxu1 }
 0x310   :  { %v1708_v52 = vadd.f32 %v1675_v29, %v1578_v1  ;;  %v1433_v1 = vpop.f32.mrf.mxu3  ;;  %v1563_v29 = vpop.f32.mrf.mxu0 }
 0x312   :  { %v1740_v59 = vadd.f32 %v1724_v53, %v1708_v52  ;;  %v1325_v53 = vadd.f32 %v1303_v38, %v1190_v31  ;;  %v1584_v52 = vadd.f32 %v1560_v27, %v1454_v4  ;;  %v1305_v6 = vpop.f32.mrf.mxu2 }
 0x313   :  { %v1326_v8 = vadd.f32 %v1305_v6, %v1192_v62 }
 0x314   :  { %1756 = vst.msk [vmem:[%s3019_s9 + $0x28] sm:$0xff] %vm47_vm0, %v1740_v59  ;;  %v1455_v22 = vadd.f32 %v1433_v1, %v1325_v53 }
 0x317   :  { %v1678_v2 = vpop.f32.mrf.mxu1 }
 0x318   :  { %v1709_v17 = vadd.f32 %v1678_v2, %v1579_v58  ;;  %v1435_v58 = vpop.f32.mrf.mxu3  ;;  %v1585_v2 = vadd.f32 %v1563_v29, %v1455_v22 }
 0x319   :  { %v1456_v54 = vadd.f32 %v1435_v58, %v1326_v8 }
 0x31a   :  { %v1741_v25 = vadd.f32 %v1725_v16, %v1709_v17  ;;  %v1731_v17 = vld [vmem:[%s3010_s0 + $0x60] sm:$0xff]  ;;  %v1308_v3 = vpop.f32.mrf.mxu2 }
 0x31c   :  { %1757 = vst.msk [vmem:[%s3019_s9 + $0x30] sm:$0xff] %vm47_vm0, %v1741_v25  ;;  %v1565_v25 = vpop.f32.mrf.mxu0 }
 0x31f   :  { %v1680_v37 = vpop.f32.mrf.mxu1 }
 0x320   :  { %v1710_v23 = vadd.f32 %v1680_v37, %v1580_v41  ;;  %v1327_v41 = vadd.f32 %v1308_v3, %v1195_v56  ;;  %v1586_v37 = vadd.f32 %v1565_v25, %v1456_v54 }
 0x322   :  { %v1742_v40 = vadd.f32 %v1726_v15, %v1710_v23  ;;  %v1438_v15 = vpop.f32.mrf.mxu3  ;;  %v1732_v23 = vld [vmem:[%s3010_s0 + $0x68] sm:$0xff]  ;;  %v1310_v57 = vpop.f32.mrf.mxu2 }
 0x323   :  { %v1457_v61 = vadd.f32 %v1438_v15, %v1327_v41 }
 0x324   :  { %1758 = vst.msk [vmem:[%s3019_s9 + $0x38] sm:$0xff] %vm47_vm0, %v1742_v40  ;;  %v1568_v49 = vpop.f32.mrf.mxu0 }
 0x325   :  { %v1587_v33 = vadd.f32 %v1568_v49, %v1457_v61 }
 0x327   :  { %v1683_v21 = vpop.f32.mrf.mxu1 }
 0x328   :  { %v1711_v11 = vadd.f32 %v1683_v21, %v1581_v36  ;;  %v1328_v36 = vadd.f32 %v1310_v57, %v1197_v30 }
 0x32a   :  { %v1743_v34 = vadd.f32 %v1727_v28, %v1711_v11  ;;  %v1733_v28 = vld [vmem:[%s3010_s0 + $0x70] sm:$0xff]  ;;  %v1440_v44 = vpop.f32.mrf.mxu3 }
 0x32b   :  { %v1458_v39 = vadd.f32 %v1440_v44, %v1328_v36 }
 0x32c   :  { %1759 = vst.msk [vmem:[%s3019_s9 + $0x40] sm:$0xff] %vm47_vm0, %v1743_v34  ;;  %v1570_v51 = vpop.f32.mrf.mxu0 }
 0x32d   :  { %v1588_v46 = vadd.f32 %v1570_v51, %v1458_v39 }
 0x32f   :  { %v1685_v5 = vpop.f32.mrf.mxu1 }
 0x330   :  { %v1712_v0 = vadd.f32 %v1685_v5, %v1582_v50 }
 0x332   :  { %v1744_v19 = vadd.f32 %v1728_v43, %v1712_v0 }
 0x334   :  { %1760 = vst.msk [vmem:[%s3019_s9 + $0x48] sm:$0xff] %vm47_vm0, %v1744_v19 }
 0x337   :  { %v1688_v18 = vpop.f32.mrf.mxu1 }
 0x338   :  { %v1713_v9 = vadd.f32 %v1688_v18, %v1583_v45 }
 0x33a   :  { %v1745_v14 = vadd.f32 %v1729_v24, %v1713_v9 }
 0x33c   :  { %1761 = vst.msk [vmem:[%s3019_s9 + $0x50] sm:$0xff] %vm47_vm0, %v1745_v14 }
 0x33f   :  { %v1690_v59 = vpop.f32.mrf.mxu1 }
 0x340   :  { %v1714_v48 = vadd.f32 %v1690_v59, %v1584_v52 }
 0x342   :  { %v1746_v10 = vadd.f32 %v1730_v7, %v1714_v48 }
 0x344   :  { %1762 = vst.msk [vmem:[%s3019_s9 + $0x58] sm:$0xff] %vm47_vm0, %v1746_v10 }
 0x347   :  { %v1693_v16 = vpop.f32.mrf.mxu1 }
 0x348   :  { %v1715_v55 = vadd.f32 %v1693_v16, %v1585_v2 }
 0x34a   :  { %v1747_v32 = vadd.f32 %v1731_v17, %v1715_v55 }
 0x34c   :  { %1763 = vst.msk [vmem:[%s3019_s9 + $0x60] sm:$0xff] %vm47_vm0, %v1747_v32 }
 0x34f   :  { %v1695_v35 = vpop.f32.mrf.mxu1 }
 0x350   :  { %v1716_v26 = vadd.f32 %v1695_v35, %v1586_v37 }
 0x352   :  { %v1748_v40 = vadd.f32 %v1732_v23, %v1716_v26 }
 0x354   :  { %1764 = vst.msk [vmem:[%s3019_s9 + $0x68] sm:$0xff] %vm47_vm0, %v1748_v40 }
 0x357   :  { %v1698_v21 = vpop.f32.mrf.mxu1 }
 0x358   :  { %v1717_v11 = vadd.f32 %v1698_v21, %v1587_v33 }
 0x35a   :  { %v1749_v34 = vadd.f32 %v1733_v28, %v1717_v11 }
 0x35c   :  { %1765 = vst.msk [vmem:[%s3019_s9 + $0x70] sm:$0xff] %vm47_vm0, %v1749_v34 }
 0x35f   :  { %v1700_v12 = vpop.f32.mrf.mxu1 }
 0x360   :  { %v1718_v42 = vadd.f32 %v1700_v12, %v1588_v46 }
 0x362   :  { %v1750_v50 = vadd.f32 %v1734_v13, %v1718_v42 }
 0x364   :  { %1766 = vst.msk [vmem:[%s3019_s9 + $0x78] sm:$0xff] %vm47_vm0, %v1750_v50 }
 0x365   :  { %1771 = vsyncpa [#allocation4], 1 }

</bundles_post_ra>
